<compile_context>
chip_gen: v6e
topology: v6e:2x2x1
jax: 0.10.0
libtpu: 0.0.40
codegen_flags: <defaults>
</compile_context>

<pallas_src>
import functools

import jax
import jax.numpy as jnp
from jax.experimental import pallas as pl
from jax.experimental.pallas import tpu as pltpu

INPUT_SIZE = 10
HIDDEN_SIZE = 20

_BP = 8        # batch padded to one sublane tile
_HP = 128      # each gate padded to one full lane tile
_G = 4 * _HP   # lane-aligned gate axis: [i | f | g | o], 128 lanes each


def prepare_lstm_params(w_ih, w_hh, b_ih, b_hh):
    """One-off (parameter-load-time) re-layout of nn.LSTM weights.

    Done ONCE per parameter set -- not per forward call -- so the per-call
    path carries no padded-weight HBM churn (the padded W_hh alone is 256 KB
    of mostly zeros).

    Returns lane-aligned, zero-padded tensors:
      w_ih_t: (I, 4*Hp)   gate g, unit j lands at column g*Hp + j
      w_hh_t: (Hp, 4*Hp)  contraction rows >= H are zero
      b:      (1, 4*Hp)   combined bias, zero-padded per gate

    NOTE (correctness invariant): the padding MUST be exact zeros.  Together
    with zero-padded h0/c0 lanes this keeps all padded hidden/cell lanes
    exactly 0 through the recurrence (gate pre-activations are 0 there, so
    g = tanh(0) = 0 and c_pad/h_pad stay 0).
    """
    H = w_hh.shape[-1]
    I = w_ih.shape[-1]
    f32 = jnp.float32

    w_ih_p = jnp.pad(w_ih.astype(f32).reshape(4, H, I),
                     ((0, 0), (0, _HP - H), (0, 0)))
    w_ih_t = jnp.transpose(w_ih_p, (2, 0, 1)).reshape(I, _G)

    w_hh_p = jnp.pad(w_hh.astype(f32).reshape(4, H, H),
                     ((0, 0), (0, _HP - H), (0, _HP - H)))
    w_hh_t = jnp.transpose(w_hh_p, (2, 0, 1)).reshape(_HP, _G)

    b = jnp.pad((b_ih + b_hh).astype(f32).reshape(4, H),
                ((0, 0), (0, _HP - H))).reshape(1, _G)
    return w_ih_t, w_hh_t, b


def _sigmoid1(x):
    # Exactly one EUP op per gate: sigmoid(x) = 0.5 * (tanh(0.5*x) + 1).
    # Avoids a possible exp + reciprocal (2 EUP ops) lowering on the serial
    # per-step gate chain.  Mathematically exact identity (safe for 1e-5).
    return 0.5 * jnp.tanh(0.5 * x) + 0.5


def _lstm_kernel(T, x_ref, h0_ref, c0_ref, w_ih_ref, w_hh_ref, b_ref,
                 y_ref, gx_ref):
    f32 = jnp.float32

    # (1) Hoisted input projection + bias: one MXU matmul covers all T steps.
    gx_ref[...] = (
        jnp.dot(x_ref[...], w_ih_ref[...], preferred_element_type=f32)
        + b_ref[...])

    # (2) Load the recurrent weights once; every per-step matmul uses this
    # same RHS value so the MXU weight latch can be reused across the
    # unrolled steps instead of re-streaming W_hh each iteration.
    w_hh = w_hh_ref[...]                        # (Hp, 4*Hp) f32

    # (3) Recurrence, fully unrolled (T is a small static Python int).
    # h/c stay in vregs; per step the serial chain is one (Bp,Hp)x(Hp,4Hp)
    # MXU matmul + lane-aligned VPU/EUP gate math.
    # Padded lanes/rows stay exactly 0 (see prepare_lstm_params invariant).
    h = h0_ref[...]                             # (Bp, Hp) f32
    c = c0_ref[...]                             # (Bp, Hp) f32
    for t in range(T):
        r0, r1 = t * _BP, (t + 1) * _BP
        gates = gx_ref[r0:r1, :] + jnp.dot(h, w_hh,
                                           preferred_element_type=f32)
        # Slice the four lane-aligned gate blocks immediately so the 512-wide
        # intermediate dies early (keeps vreg pressure / spills down).
        i_g = _sigmoid1(gates[:, 0 * _HP:1 * _HP])
        f_g = _sigmoid1(gates[:, 1 * _HP:2 * _HP])
        g_g = jnp.tanh(gates[:, 2 * _HP:3 * _HP])
        o_g = _sigmoid1(gates[:, 3 * _HP:4 * _HP])
        c = f_g * c + i_g * g_g
        h = o_g * jnp.tanh(c)
        # Lane-dense (128-wide, unmasked) store into the resident y block.
        y_ref[r0:r1, :] = h

    # c_n is folded into the same output buffer (last Bp rows): one output,
    # one writeback DMA instead of two.
    y_ref[T * _BP:(T + 1) * _BP, :] = c


@jax.jit
def lstm_pallas(x, h0, c0, w_ih_t, w_hh_t, b):
    """nn.LSTM(10, 20, 1) forward.

    x: (T, B, I) time-major; h0, c0: (1, B, H); weights already re-laid-out
    by prepare_lstm_params().  Returns (y, (h_n, c_n)) with PyTorch shapes.
    """
    T, B, I = x.shape
    H = HIDDEN_SIZE
    dtype = x.dtype
    f32 = jnp.float32

    # Cheap per-call layout plumbing (activations only, < 1 KB total).
    x2d = jnp.pad(x.astype(f32),
                  ((0, 0), (0, _BP - B), (0, 0))).reshape(T * _BP, I)
    h0p = jnp.pad(h0[0].astype(f32), ((0, _BP - B), (0, _HP - H)))
    c0p = jnp.pad(c0[0].astype(f32), ((0, _BP - B), (0, _HP - H)))

    grid_spec = pltpu.PrefetchScalarGridSpec(
        num_scalar_prefetch=0,
        grid=(1,),
        in_specs=[
            pl.BlockSpec((T * _BP, I), lambda i: (0, 0)),   # x (all steps)
            pl.BlockSpec((_BP, _HP), lambda i: (0, 0)),     # h0
            pl.BlockSpec((_BP, _HP), lambda i: (0, 0)),     # c0
            pl.BlockSpec((I, _G), lambda i: (0, 0)),        # W_ih^T (padded)
            pl.BlockSpec((_HP, _G), lambda i: (0, 0)),      # W_hh^T (padded)
            pl.BlockSpec((1, _G), lambda i: (0, 0)),        # bias
        ],
        out_specs=pl.BlockSpec(((T + 1) * _BP, _HP), lambda i: (0, 0)),
        scratch_shapes=[
            pltpu.VMEM((T * _BP, _G), f32),   # hoisted x-projection
        ],
    )

    out = pl.pallas_call(
        functools.partial(_lstm_kernel, T),
        out_shape=jax.ShapeDtypeStruct(((T + 1) * _BP, _HP), f32),
        grid_spec=grid_spec,
        compiler_params=pltpu.CompilerParams(
            dimension_semantics=("arbitrary",)),
    )(x2d, h0p, c0p, w_ih_t, w_hh_t, b)

    # Strip padding; h_n is the last time step of y; c_n lives in the tail
    # block of the fused output.
    y = out[:T * _BP].reshape(T, _BP, _HP)[:, :B, :H].astype(dtype)
    h_n = y[-1:, :, :]
    c_n = out[T * _BP:T * _BP + B, :H][None].astype(dtype)
    return y, (h_n, c_n)


def lstm_reference(x, h0, c0, w_ih, w_hh, b_ih, b_hh):
    """Pure-JAX reference matching torch.nn.LSTM semantics (1 layer)."""
    H = h0.shape[-1]

    def step(carry, x_t):
        h, c = carry
        gates = (x_t @ w_ih.T + b_ih) + (h @ w_hh.T + b_hh)
        i = jax.nn.sigmoid(gates[:, 0 * H:1 * H])
        f = jax.nn.sigmoid(gates[:, 1 * H:2 * H])
        g = jnp.tanh(gates[:, 2 * H:3 * H])
        o = jax.nn.sigmoid(gates[:, 3 * H:4 * H])
        c = f * c + i * g
        h = o * jnp.tanh(c)
        return (h, c), h

    (h_n, c_n), ys = jax.lax.scan(step, (h0[0], c0[0]), x)
    return ys, (h_n[None], c_n[None])


if __name__ == "__main__":
    T, B, I, H = 8, 2, INPUT_SIZE, HIDDEN_SIZE
    key = jax.random.PRNGKey(0)
    kx, kh, kc, k1, k2, k3, k4 = jax.random.split(key, 7)

    x = jax.random.normal(kx, (T, B, I), dtype=jnp.float32)
    h0 = jax.random.normal(kh, (1, B, H), dtype=jnp.float32)
    c0 = jax.random.normal(kc, (1, B, H), dtype=jnp.float32)

    # Deterministic params mirroring nn.LSTM's uniform(-1/sqrt(H), 1/sqrt(H)).
    bound = 1.0 / jnp.sqrt(jnp.float32(H))
    w_ih = jax.random.uniform(k1, (4 * H, I), jnp.float32, -bound, bound)
    w_hh = jax.random.uniform(k2, (4 * H, H), jnp.float32, -bound, bound)
    b_ih = jax.random.uniform(k3, (4 * H,), jnp.float32, -bound, bound)
    b_hh = jax.random.uniform(k4, (4 * H,), jnp.float32, -bound, bound)

    # One-off parameter re-layout (parameter-load time, not per forward call).
    w_ih_t, w_hh_t, b = jax.block_until_ready(
        prepare_lstm_params(w_ih, w_hh, b_ih, b_hh))

    y, (h_n, c_n) = lstm_pallas(x, h0, c0, w_ih_t, w_hh_t, b)
    jax.block_until_ready((y, h_n, c_n))

    y_ref, (h_ref, c_ref) = lstm_reference(x, h0, c0, w_ih, w_hh, b_ih, b_hh)
    assert jnp.allclose(y, y_ref, atol=1e-5, rtol=1e-5)
    assert jnp.allclose(h_n, h_ref, atol=1e-5, rtol=1e-5)
    assert jnp.allclose(c_n, c_ref, atol=1e-5, rtol=1e-5)

    print("KERNEL_OK")
</pallas_src>

<mosaic_0001>
module attributes {stable_mosaic.version = 11 : i64} {
  func.func @_lstm_kernel(%arg0: i32, %arg1: memref<64x10xf32, #tpu.memory_space<vmem>>, %arg2: memref<8x128xf32, #tpu.memory_space<vmem>>, %arg3: memref<8x128xf32, #tpu.memory_space<vmem>>, %arg4: memref<10x512xf32, #tpu.memory_space<vmem>>, %arg5: memref<128x512xf32, #tpu.memory_space<vmem>>, %arg6: memref<1x512xf32, #tpu.memory_space<vmem>>, %arg7: memref<72x128xf32, #tpu.memory_space<vmem>>, %arg8: memref<64x512xf32, #tpu.memory_space<vmem>>) attributes {dimension_semantics = [#tpu.dimension_semantics<arbitrary>], iteration_bounds = array<i64: 1>, scalar_prefetch = 0 : i64, scratch_operands = 1 : i64, tpu.core_type = #tpu.core_type<tc>, window_params = [{pipeline_mode = #tpu.pipeline_mode<synchronous>, transform_indices = @transform_0, window_bounds = array<i64: 64, 10>}, {pipeline_mode = #tpu.pipeline_mode<synchronous>, transform_indices = @transform_1, window_bounds = array<i64: 8, 128>}, {pipeline_mode = #tpu.pipeline_mode<synchronous>, transform_indices = @transform_2, window_bounds = array<i64: 8, 128>}, {pipeline_mode = #tpu.pipeline_mode<synchronous>, transform_indices = @transform_3, window_bounds = array<i64: 10, 512>}, {pipeline_mode = #tpu.pipeline_mode<synchronous>, transform_indices = @transform_4, window_bounds = array<i64: 128, 512>}, {pipeline_mode = #tpu.pipeline_mode<synchronous>, transform_indices = @transform_5, window_bounds = array<i64: 1, 512>}, {pipeline_mode = #tpu.pipeline_mode<synchronous>, transform_indices = @transform_6, window_bounds = array<i64: 72, 128>}]} {
    %c0 = arith.constant 0 : index
    %c0_0 = arith.constant 0 : index
    %0 = vector.load %arg1[%c0, %c0_0] : memref<64x10xf32, #tpu.memory_space<vmem>>, vector<64x10xf32>
    %c0_1 = arith.constant 0 : index
    %c0_2 = arith.constant 0 : index
    %1 = vector.load %arg4[%c0_1, %c0_2] : memref<10x512xf32, #tpu.memory_space<vmem>>, vector<10x512xf32>
    %cst = arith.constant dense<0.000000e+00> : vector<64x512xf32>
    %2 = tpu.matmul %0, %1, %cst {dimension_numbers = #tpu.dot_dimension_numbers<[1], [0], [0], [1], [0, 0, 1, 1], [], []>} : vector<64x10xf32>, vector<10x512xf32>, vector<64x512xf32> -> vector<64x512xf32>
    %c0_3 = arith.constant 0 : index
    %c0_4 = arith.constant 0 : index
    %3 = vector.load %arg6[%c0_3, %c0_4] : memref<1x512xf32, #tpu.memory_space<vmem>>, vector<1x512xf32>
    %4 = vector.broadcast %3 : vector<1x512xf32> to vector<64x512xf32>
    %5 = arith.addf %2, %4 : vector<64x512xf32>
    %c0_5 = arith.constant 0 : index
    %c0_6 = arith.constant 0 : index
    %6 = vector.load %arg8[%c0_5, %c0_6] : memref<64x512xf32, #tpu.memory_space<vmem>>, vector<64x512xf32>
    tpu.vector_store %arg8[%c0_5, %c0_6], %5 {strides = array<i32>} : memref<64x512xf32, #tpu.memory_space<vmem>>, vector<64x512xf32>,
    %c0_7 = arith.constant 0 : index
    %c0_8 = arith.constant 0 : index
    %7 = vector.load %arg5[%c0_7, %c0_8] : memref<128x512xf32, #tpu.memory_space<vmem>>, vector<128x512xf32>
    %c0_9 = arith.constant 0 : index
    %c0_10 = arith.constant 0 : index
    %8 = vector.load %arg2[%c0_9, %c0_10] : memref<8x128xf32, #tpu.memory_space<vmem>>, vector<8x128xf32>
    %c0_11 = arith.constant 0 : index
    %c0_12 = arith.constant 0 : index
    %9 = vector.load %arg3[%c0_11, %c0_12] : memref<8x128xf32, #tpu.memory_space<vmem>>, vector<8x128xf32>
    %c0_13 = arith.constant 0 : index
    %c0_14 = arith.constant 0 : index
    %10 = vector.load %arg8[%c0_13, %c0_14] : memref<64x512xf32, #tpu.memory_space<vmem>>, vector<8x512xf32>
    %cst_15 = arith.constant dense<0.000000e+00> : vector<8x512xf32>
    %11 = tpu.matmul %8, %7, %cst_15 {dimension_numbers = #tpu.dot_dimension_numbers<[1], [0], [0], [1], [0, 0, 1, 1], [], []>} : vector<8x128xf32>, vector<128x512xf32>, vector<8x512xf32> -> vector<8x512xf32>
    %12 = arith.addf %10, %11 : vector<8x512xf32>
    %13 = vector.extract_strided_slice %12 {offsets = [0, 0], sizes = [8, 128], strides = [1, 1]} : vector<8x512xf32> to vector<8x128xf32>
    %cst_16 = arith.constant 5.000000e-01 : f32
    %14 = vector.broadcast %cst_16 : f32 to vector<8x128xf32>
    %15 = arith.mulf %14, %13 : vector<8x128xf32>
    %16 = math.tanh %15 : vector<8x128xf32>
    %cst_17 = arith.constant 5.000000e-01 : f32
    %17 = vector.broadcast %cst_17 : f32 to vector<8x128xf32>
    %18 = arith.mulf %17, %16 : vector<8x128xf32>
    %cst_18 = arith.constant 5.000000e-01 : f32
    %19 = vector.broadcast %cst_18 : f32 to vector<8x128xf32>
    %20 = arith.addf %18, %19 : vector<8x128xf32>
    %21 = vector.extract_strided_slice %12 {offsets = [0, 128], sizes = [8, 128], strides = [1, 1]} : vector<8x512xf32> to vector<8x128xf32>
    %cst_19 = arith.constant 5.000000e-01 : f32
    %22 = vector.broadcast %cst_19 : f32 to vector<8x128xf32>
    %23 = arith.mulf %22, %21 : vector<8x128xf32>
    %24 = math.tanh %23 : vector<8x128xf32>
    %cst_20 = arith.constant 5.000000e-01 : f32
    %25 = vector.broadcast %cst_20 : f32 to vector<8x128xf32>
    %26 = arith.mulf %25, %24 : vector<8x128xf32>
    %cst_21 = arith.constant 5.000000e-01 : f32
    %27 = vector.broadcast %cst_21 : f32 to vector<8x128xf32>
    %28 = arith.addf %26, %27 : vector<8x128xf32>
    %29 = vector.extract_strided_slice %12 {offsets = [0, 256], sizes = [8, 128], strides = [1, 1]} : vector<8x512xf32> to vector<8x128xf32>
    %30 = math.tanh %29 : vector<8x128xf32>
    %31 = vector.extract_strided_slice %12 {offsets = [0, 384], sizes = [8, 128], strides = [1, 1]} : vector<8x512xf32> to vector<8x128xf32>
    %cst_22 = arith.constant 5.000000e-01 : f32
    %32 = vector.broadcast %cst_22 : f32 to vector<8x128xf32>
    %33 = arith.mulf %32, %31 : vector<8x128xf32>
    %34 = math.tanh %33 : vector<8x128xf32>
    %cst_23 = arith.constant 5.000000e-01 : f32
    %35 = vector.broadcast %cst_23 : f32 to vector<8x128xf32>
    %36 = arith.mulf %35, %34 : vector<8x128xf32>
    %cst_24 = arith.constant 5.000000e-01 : f32
    %37 = vector.broadcast %cst_24 : f32 to vector<8x128xf32>
    %38 = arith.addf %36, %37 : vector<8x128xf32>
    %39 = arith.mulf %28, %9 : vector<8x128xf32>
    %40 = arith.mulf %20, %30 : vector<8x128xf32>
    %41 = arith.addf %39, %40 : vector<8x128xf32>
    %42 = math.tanh %41 : vector<8x128xf32>
    %43 = arith.mulf %38, %42 : vector<8x128xf32>
    %c0_25 = arith.constant 0 : index
    %c0_26 = arith.constant 0 : index
    %44 = vector.load %arg7[%c0_25, %c0_26] : memref<72x128xf32, #tpu.memory_space<vmem>>, vector<8x128xf32>
    tpu.vector_store %arg7[%c0_25, %c0_26], %43 {strides = array<i32>} : memref<72x128xf32, #tpu.memory_space<vmem>>, vector<8x128xf32>,
    %c8 = arith.constant 8 : index
    %c0_27 = arith.constant 0 : index
    %45 = vector.load %arg8[%c8, %c0_27] : memref<64x512xf32, #tpu.memory_space<vmem>>, vector<8x512xf32>
    %cst_28 = arith.constant dense<0.000000e+00> : vector<8x512xf32>
    %46 = tpu.matmul %43, %7, %cst_28 {dimension_numbers = #tpu.dot_dimension_numbers<[1], [0], [0], [1], [0, 0, 1, 1], [], []>} : vector<8x128xf32>, vector<128x512xf32>, vector<8x512xf32> -> vector<8x512xf32>
    %47 = arith.addf %45, %46 : vector<8x512xf32>
    %48 = vector.extract_strided_slice %47 {offsets = [0, 0], sizes = [8, 128], strides = [1, 1]} : vector<8x512xf32> to vector<8x128xf32>
    %cst_29 = arith.constant 5.000000e-01 : f32
    %49 = vector.broadcast %cst_29 : f32 to vector<8x128xf32>
    %50 = arith.mulf %49, %48 : vector<8x128xf32>
    %51 = math.tanh %50 : vector<8x128xf32>
    %cst_30 = arith.constant 5.000000e-01 : f32
    %52 = vector.broadcast %cst_30 : f32 to vector<8x128xf32>
    %53 = arith.mulf %52, %51 : vector<8x128xf32>
    %cst_31 = arith.constant 5.000000e-01 : f32
    %54 = vector.broadcast %cst_31 : f32 to vector<8x128xf32>
    %55 = arith.addf %53, %54 : vector<8x128xf32>
    %56 = vector.extract_strided_slice %47 {offsets = [0, 128], sizes = [8, 128], strides = [1, 1]} : vector<8x512xf32> to vector<8x128xf32>
    %cst_32 = arith.constant 5.000000e-01 : f32
    %57 = vector.broadcast %cst_32 : f32 to vector<8x128xf32>
    %58 = arith.mulf %57, %56 : vector<8x128xf32>
    %59 = math.tanh %58 : vector<8x128xf32>
    %cst_33 = arith.constant 5.000000e-01 : f32
    %60 = vector.broadcast %cst_33 : f32 to vector<8x128xf32>
    %61 = arith.mulf %60, %59 : vector<8x128xf32>
    %cst_34 = arith.constant 5.000000e-01 : f32
    %62 = vector.broadcast %cst_34 : f32 to vector<8x128xf32>
    %63 = arith.addf %61, %62 : vector<8x128xf32>
    %64 = vector.extract_strided_slice %47 {offsets = [0, 256], sizes = [8, 128], strides = [1, 1]} : vector<8x512xf32> to vector<8x128xf32>
    %65 = math.tanh %64 : vector<8x128xf32>
    %66 = vector.extract_strided_slice %47 {offsets = [0, 384], sizes = [8, 128], strides = [1, 1]} : vector<8x512xf32> to vector<8x128xf32>
    %cst_35 = arith.constant 5.000000e-01 : f32
    %67 = vector.broadcast %cst_35 : f32 to vector<8x128xf32>
    %68 = arith.mulf %67, %66 : vector<8x128xf32>
    %69 = math.tanh %68 : vector<8x128xf32>
    %cst_36 = arith.constant 5.000000e-01 : f32
    %70 = vector.broadcast %cst_36 : f32 to vector<8x128xf32>
    %71 = arith.mulf %70, %69 : vector<8x128xf32>
    %cst_37 = arith.constant 5.000000e-01 : f32
    %72 = vector.broadcast %cst_37 : f32 to vector<8x128xf32>
    %73 = arith.addf %71, %72 : vector<8x128xf32>
    %74 = arith.mulf %63, %41 : vector<8x128xf32>
    %75 = arith.mulf %55, %65 : vector<8x128xf32>
    %76 = arith.addf %74, %75 : vector<8x128xf32>
    %77 = math.tanh %76 : vector<8x128xf32>
    %78 = arith.mulf %73, %77 : vector<8x128xf32>
    %c8_38 = arith.constant 8 : index
    %c0_39 = arith.constant 0 : index
    %79 = vector.load %arg7[%c8_38, %c0_39] : memref<72x128xf32, #tpu.memory_space<vmem>>, vector<8x128xf32>
    tpu.vector_store %arg7[%c8_38, %c0_39], %78 {strides = array<i32>} : memref<72x128xf32, #tpu.memory_space<vmem>>, vector<8x128xf32>,
    %c16 = arith.constant 16 : index
    %c0_40 = arith.constant 0 : index
    %80 = vector.load %arg8[%c16, %c0_40] : memref<64x512xf32, #tpu.memory_space<vmem>>, vector<8x512xf32>
    %cst_41 = arith.constant dense<0.000000e+00> : vector<8x512xf32>
    %81 = tpu.matmul %78, %7, %cst_41 {dimension_numbers = #tpu.dot_dimension_numbers<[1], [0], [0], [1], [0, 0, 1, 1], [], []>} : vector<8x128xf32>, vector<128x512xf32>, vector<8x512xf32> -> vector<8x512xf32>
    %82 = arith.addf %80, %81 : vector<8x512xf32>
    %83 = vector.extract_strided_slice %82 {offsets = [0, 0], sizes = [8, 128], strides = [1, 1]} : vector<8x512xf32> to vector<8x128xf32>
    %cst_42 = arith.constant 5.000000e-01 : f32
    %84 = vector.broadcast %cst_42 : f32 to vector<8x128xf32>
    %85 = arith.mulf %84, %83 : vector<8x128xf32>
    %86 = math.tanh %85 : vector<8x128xf32>
    %cst_43 = arith.constant 5.000000e-01 : f32
    %87 = vector.broadcast %cst_43 : f32 to vector<8x128xf32>
    %88 = arith.mulf %87, %86 : vector<8x128xf32>
    %cst_44 = arith.constant 5.000000e-01 : f32
    %89 = vector.broadcast %cst_44 : f32 to vector<8x128xf32>
    %90 = arith.addf %88, %89 : vector<8x128xf32>
    %91 = vector.extract_strided_slice %82 {offsets = [0, 128], sizes = [8, 128], strides = [1, 1]} : vector<8x512xf32> to vector<8x128xf32>
    %cst_45 = arith.constant 5.000000e-01 : f32
    %92 = vector.broadcast %cst_45 : f32 to vector<8x128xf32>
    %93 = arith.mulf %92, %91 : vector<8x128xf32>
    %94 = math.tanh %93 : vector<8x128xf32>
    %cst_46 = arith.constant 5.000000e-01 : f32
    %95 = vector.broadcast %cst_46 : f32 to vector<8x128xf32>
    %96 = arith.mulf %95, %94 : vector<8x128xf32>
    %cst_47 = arith.constant 5.000000e-01 : f32
    %97 = vector.broadcast %cst_47 : f32 to vector<8x128xf32>
    %98 = arith.addf %96, %97 : vector<8x128xf32>
    %99 = vector.extract_strided_slice %82 {offsets = [0, 256], sizes = [8, 128], strides = [1, 1]} : vector<8x512xf32> to vector<8x128xf32>
    %100 = math.tanh %99 : vector<8x128xf32>
    %101 = vector.extract_strided_slice %82 {offsets = [0, 384], sizes = [8, 128], strides = [1, 1]} : vector<8x512xf32> to vector<8x128xf32>
    %cst_48 = arith.constant 5.000000e-01 : f32
    %102 = vector.broadcast %cst_48 : f32 to vector<8x128xf32>
    %103 = arith.mulf %102, %101 : vector<8x128xf32>
    %104 = math.tanh %103 : vector<8x128xf32>
    %cst_49 = arith.constant 5.000000e-01 : f32
    %105 = vector.broadcast %cst_49 : f32 to vector<8x128xf32>
    %106 = arith.mulf %105, %104 : vector<8x128xf32>
    %cst_50 = arith.constant 5.000000e-01 : f32
    %107 = vector.broadcast %cst_50 : f32 to vector<8x128xf32>
    %108 = arith.addf %106, %107 : vector<8x128xf32>
    %109 = arith.mulf %98, %76 : vector<8x128xf32>
    %110 = arith.mulf %90, %100 : vector<8x128xf32>
    %111 = arith.addf %109, %110 : vector<8x128xf32>
    %112 = math.tanh %111 : vector<8x128xf32>
    %113 = arith.mulf %108, %112 : vector<8x128xf32>
    %c16_51 = arith.constant 16 : index
    %c0_52 = arith.constant 0 : index
    %114 = vector.load %arg7[%c16_51, %c0_52] : memref<72x128xf32, #tpu.memory_space<vmem>>, vector<8x128xf32>
    tpu.vector_store %arg7[%c16_51, %c0_52], %113 {strides = array<i32>} : memref<72x128xf32, #tpu.memory_space<vmem>>, vector<8x128xf32>,
    %c24 = arith.constant 24 : index
    %c0_53 = arith.constant 0 : index
    %115 = vector.load %arg8[%c24, %c0_53] : memref<64x512xf32, #tpu.memory_space<vmem>>, vector<8x512xf32>
    %cst_54 = arith.constant dense<0.000000e+00> : vector<8x512xf32>
    %116 = tpu.matmul %113, %7, %cst_54 {dimension_numbers = #tpu.dot_dimension_numbers<[1], [0], [0], [1], [0, 0, 1, 1], [], []>} : vector<8x128xf32>, vector<128x512xf32>, vector<8x512xf32> -> vector<8x512xf32>
    %117 = arith.addf %115, %116 : vector<8x512xf32>
    %118 = vector.extract_strided_slice %117 {offsets = [0, 0], sizes = [8, 128], strides = [1, 1]} : vector<8x512xf32> to vector<8x128xf32>
    %cst_55 = arith.constant 5.000000e-01 : f32
    %119 = vector.broadcast %cst_55 : f32 to vector<8x128xf32>
    %120 = arith.mulf %119, %118 : vector<8x128xf32>
    %121 = math.tanh %120 : vector<8x128xf32>
    %cst_56 = arith.constant 5.000000e-01 : f32
    %122 = vector.broadcast %cst_56 : f32 to vector<8x128xf32>
    %123 = arith.mulf %122, %121 : vector<8x128xf32>
    %cst_57 = arith.constant 5.000000e-01 : f32
    %124 = vector.broadcast %cst_57 : f32 to vector<8x128xf32>
    %125 = arith.addf %123, %124 : vector<8x128xf32>
    %126 = vector.extract_strided_slice %117 {offsets = [0, 128], sizes = [8, 128], strides = [1, 1]} : vector<8x512xf32> to vector<8x128xf32>
    %cst_58 = arith.constant 5.000000e-01 : f32
    %127 = vector.broadcast %cst_58 : f32 to vector<8x128xf32>
    %128 = arith.mulf %127, %126 : vector<8x128xf32>
    %129 = math.tanh %128 : vector<8x128xf32>
    %cst_59 = arith.constant 5.000000e-01 : f32
    %130 = vector.broadcast %cst_59 : f32 to vector<8x128xf32>
    %131 = arith.mulf %130, %129 : vector<8x128xf32>
    %cst_60 = arith.constant 5.000000e-01 : f32
    %132 = vector.broadcast %cst_60 : f32 to vector<8x128xf32>
    %133 = arith.addf %131, %132 : vector<8x128xf32>
    %134 = vector.extract_strided_slice %117 {offsets = [0, 256], sizes = [8, 128], strides = [1, 1]} : vector<8x512xf32> to vector<8x128xf32>
    %135 = math.tanh %134 : vector<8x128xf32>
    %136 = vector.extract_strided_slice %117 {offsets = [0, 384], sizes = [8, 128], strides = [1, 1]} : vector<8x512xf32> to vector<8x128xf32>
    %cst_61 = arith.constant 5.000000e-01 : f32
    %137 = vector.broadcast %cst_61 : f32 to vector<8x128xf32>
    %138 = arith.mulf %137, %136 : vector<8x128xf32>
    %139 = math.tanh %138 : vector<8x128xf32>
    %cst_62 = arith.constant 5.000000e-01 : f32
    %140 = vector.broadcast %cst_62 : f32 to vector<8x128xf32>
    %141 = arith.mulf %140, %139 : vector<8x128xf32>
    %cst_63 = arith.constant 5.000000e-01 : f32
    %142 = vector.broadcast %cst_63 : f32 to vector<8x128xf32>
    %143 = arith.addf %141, %142 : vector<8x128xf32>
    %144 = arith.mulf %133, %111 : vector<8x128xf32>
    %145 = arith.mulf %125, %135 : vector<8x128xf32>
    %146 = arith.addf %144, %145 : vector<8x128xf32>
    %147 = math.tanh %146 : vector<8x128xf32>
    %148 = arith.mulf %143, %147 : vector<8x128xf32>
    %c24_64 = arith.constant 24 : index
    %c0_65 = arith.constant 0 : index
    %149 = vector.load %arg7[%c24_64, %c0_65] : memref<72x128xf32, #tpu.memory_space<vmem>>, vector<8x128xf32>
    tpu.vector_store %arg7[%c24_64, %c0_65], %148 {strides = array<i32>} : memref<72x128xf32, #tpu.memory_space<vmem>>, vector<8x128xf32>,
    %c32 = arith.constant 32 : index
    %c0_66 = arith.constant 0 : index
    %150 = vector.load %arg8[%c32, %c0_66] : memref<64x512xf32, #tpu.memory_space<vmem>>, vector<8x512xf32>
    %cst_67 = arith.constant dense<0.000000e+00> : vector<8x512xf32>
    %151 = tpu.matmul %148, %7, %cst_67 {dimension_numbers = #tpu.dot_dimension_numbers<[1], [0], [0], [1], [0, 0, 1, 1], [], []>} : vector<8x128xf32>, vector<128x512xf32>, vector<8x512xf32> -> vector<8x512xf32>
    %152 = arith.addf %150, %151 : vector<8x512xf32>
    %153 = vector.extract_strided_slice %152 {offsets = [0, 0], sizes = [8, 128], strides = [1, 1]} : vector<8x512xf32> to vector<8x128xf32>
    %cst_68 = arith.constant 5.000000e-01 : f32
    %154 = vector.broadcast %cst_68 : f32 to vector<8x128xf32>
    %155 = arith.mulf %154, %153 : vector<8x128xf32>
    %156 = math.tanh %155 : vector<8x128xf32>
    %cst_69 = arith.constant 5.000000e-01 : f32
    %157 = vector.broadcast %cst_69 : f32 to vector<8x128xf32>
    %158 = arith.mulf %157, %156 : vector<8x128xf32>
    %cst_70 = arith.constant 5.000000e-01 : f32
    %159 = vector.broadcast %cst_70 : f32 to vector<8x128xf32>
    %160 = arith.addf %158, %159 : vector<8x128xf32>
    %161 = vector.extract_strided_slice %152 {offsets = [0, 128], sizes = [8, 128], strides = [1, 1]} : vector<8x512xf32> to vector<8x128xf32>
    %cst_71 = arith.constant 5.000000e-01 : f32
    %162 = vector.broadcast %cst_71 : f32 to vector<8x128xf32>
    %163 = arith.mulf %162, %161 : vector<8x128xf32>
    %164 = math.tanh %163 : vector<8x128xf32>
    %cst_72 = arith.constant 5.000000e-01 : f32
    %165 = vector.broadcast %cst_72 : f32 to vector<8x128xf32>
    %166 = arith.mulf %165, %164 : vector<8x128xf32>
    %cst_73 = arith.constant 5.000000e-01 : f32
    %167 = vector.broadcast %cst_73 : f32 to vector<8x128xf32>
    %168 = arith.addf %166, %167 : vector<8x128xf32>
    %169 = vector.extract_strided_slice %152 {offsets = [0, 256], sizes = [8, 128], strides = [1, 1]} : vector<8x512xf32> to vector<8x128xf32>
    %170 = math.tanh %169 : vector<8x128xf32>
    %171 = vector.extract_strided_slice %152 {offsets = [0, 384], sizes = [8, 128], strides = [1, 1]} : vector<8x512xf32> to vector<8x128xf32>
    %cst_74 = arith.constant 5.000000e-01 : f32
    %172 = vector.broadcast %cst_74 : f32 to vector<8x128xf32>
    %173 = arith.mulf %172, %171 : vector<8x128xf32>
    %174 = math.tanh %173 : vector<8x128xf32>
    %cst_75 = arith.constant 5.000000e-01 : f32
    %175 = vector.broadcast %cst_75 : f32 to vector<8x128xf32>
    %176 = arith.mulf %175, %174 : vector<8x128xf32>
    %cst_76 = arith.constant 5.000000e-01 : f32
    %177 = vector.broadcast %cst_76 : f32 to vector<8x128xf32>
    %178 = arith.addf %176, %177 : vector<8x128xf32>
    %179 = arith.mulf %168, %146 : vector<8x128xf32>
    %180 = arith.mulf %160, %170 : vector<8x128xf32>
    %181 = arith.addf %179, %180 : vector<8x128xf32>
    %182 = math.tanh %181 : vector<8x128xf32>
    %183 = arith.mulf %178, %182 : vector<8x128xf32>
    %c32_77 = arith.constant 32 : index
    %c0_78 = arith.constant 0 : index
    %184 = vector.load %arg7[%c32_77, %c0_78] : memref<72x128xf32, #tpu.memory_space<vmem>>, vector<8x128xf32>
    tpu.vector_store %arg7[%c32_77, %c0_78], %183 {strides = array<i32>} : memref<72x128xf32, #tpu.memory_space<vmem>>, vector<8x128xf32>,
    %c40 = arith.constant 40 : index
    %c0_79 = arith.constant 0 : index
    %185 = vector.load %arg8[%c40, %c0_79] : memref<64x512xf32, #tpu.memory_space<vmem>>, vector<8x512xf32>
    %cst_80 = arith.constant dense<0.000000e+00> : vector<8x512xf32>
    %186 = tpu.matmul %183, %7, %cst_80 {dimension_numbers = #tpu.dot_dimension_numbers<[1], [0], [0], [1], [0, 0, 1, 1], [], []>} : vector<8x128xf32>, vector<128x512xf32>, vector<8x512xf32> -> vector<8x512xf32>
    %187 = arith.addf %185, %186 : vector<8x512xf32>
    %188 = vector.extract_strided_slice %187 {offsets = [0, 0], sizes = [8, 128], strides = [1, 1]} : vector<8x512xf32> to vector<8x128xf32>
    %cst_81 = arith.constant 5.000000e-01 : f32
    %189 = vector.broadcast %cst_81 : f32 to vector<8x128xf32>
    %190 = arith.mulf %189, %188 : vector<8x128xf32>
    %191 = math.tanh %190 : vector<8x128xf32>
    %cst_82 = arith.constant 5.000000e-01 : f32
    %192 = vector.broadcast %cst_82 : f32 to vector<8x128xf32>
    %193 = arith.mulf %192, %191 : vector<8x128xf32>
    %cst_83 = arith.constant 5.000000e-01 : f32
    %194 = vector.broadcast %cst_83 : f32 to vector<8x128xf32>
    %195 = arith.addf %193, %194 : vector<8x128xf32>
    %196 = vector.extract_strided_slice %187 {offsets = [0, 128], sizes = [8, 128], strides = [1, 1]} : vector<8x512xf32> to vector<8x128xf32>
    %cst_84 = arith.constant 5.000000e-01 : f32
    %197 = vector.broadcast %cst_84 : f32 to vector<8x128xf32>
    %198 = arith.mulf %197, %196 : vector<8x128xf32>
    %199 = math.tanh %198 : vector<8x128xf32>
    %cst_85 = arith.constant 5.000000e-01 : f32
    %200 = vector.broadcast %cst_85 : f32 to vector<8x128xf32>
    %201 = arith.mulf %200, %199 : vector<8x128xf32>
    %cst_86 = arith.constant 5.000000e-01 : f32
    %202 = vector.broadcast %cst_86 : f32 to vector<8x128xf32>
    %203 = arith.addf %201, %202 : vector<8x128xf32>
    %204 = vector.extract_strided_slice %187 {offsets = [0, 256], sizes = [8, 128], strides = [1, 1]} : vector<8x512xf32> to vector<8x128xf32>
    %205 = math.tanh %204 : vector<8x128xf32>
    %206 = vector.extract_strided_slice %187 {offsets = [0, 384], sizes = [8, 128], strides = [1, 1]} : vector<8x512xf32> to vector<8x128xf32>
    %cst_87 = arith.constant 5.000000e-01 : f32
    %207 = vector.broadcast %cst_87 : f32 to vector<8x128xf32>
    %208 = arith.mulf %207, %206 : vector<8x128xf32>
    %209 = math.tanh %208 : vector<8x128xf32>
    %cst_88 = arith.constant 5.000000e-01 : f32
    %210 = vector.broadcast %cst_88 : f32 to vector<8x128xf32>
    %211 = arith.mulf %210, %209 : vector<8x128xf32>
    %cst_89 = arith.constant 5.000000e-01 : f32
    %212 = vector.broadcast %cst_89 : f32 to vector<8x128xf32>
    %213 = arith.addf %211, %212 : vector<8x128xf32>
    %214 = arith.mulf %203, %181 : vector<8x128xf32>
    %215 = arith.mulf %195, %205 : vector<8x128xf32>
    %216 = arith.addf %214, %215 : vector<8x128xf32>
    %217 = math.tanh %216 : vector<8x128xf32>
    %218 = arith.mulf %213, %217 : vector<8x128xf32>
    %c40_90 = arith.constant 40 : index
    %c0_91 = arith.constant 0 : index
    %219 = vector.load %arg7[%c40_90, %c0_91] : memref<72x128xf32, #tpu.memory_space<vmem>>, vector<8x128xf32>
    tpu.vector_store %arg7[%c40_90, %c0_91], %218 {strides = array<i32>} : memref<72x128xf32, #tpu.memory_space<vmem>>, vector<8x128xf32>,
    %c48 = arith.constant 48 : index
    %c0_92 = arith.constant 0 : index
    %220 = vector.load %arg8[%c48, %c0_92] : memref<64x512xf32, #tpu.memory_space<vmem>>, vector<8x512xf32>
    %cst_93 = arith.constant dense<0.000000e+00> : vector<8x512xf32>
    %221 = tpu.matmul %218, %7, %cst_93 {dimension_numbers = #tpu.dot_dimension_numbers<[1], [0], [0], [1], [0, 0, 1, 1], [], []>} : vector<8x128xf32>, vector<128x512xf32>, vector<8x512xf32> -> vector<8x512xf32>
    %222 = arith.addf %220, %221 : vector<8x512xf32>
    %223 = vector.extract_strided_slice %222 {offsets = [0, 0], sizes = [8, 128], strides = [1, 1]} : vector<8x512xf32> to vector<8x128xf32>
    %cst_94 = arith.constant 5.000000e-01 : f32
    %224 = vector.broadcast %cst_94 : f32 to vector<8x128xf32>
    %225 = arith.mulf %224, %223 : vector<8x128xf32>
    %226 = math.tanh %225 : vector<8x128xf32>
    %cst_95 = arith.constant 5.000000e-01 : f32
    %227 = vector.broadcast %cst_95 : f32 to vector<8x128xf32>
    %228 = arith.mulf %227, %226 : vector<8x128xf32>
    %cst_96 = arith.constant 5.000000e-01 : f32
    %229 = vector.broadcast %cst_96 : f32 to vector<8x128xf32>
    %230 = arith.addf %228, %229 : vector<8x128xf32>
    %231 = vector.extract_strided_slice %222 {offsets = [0, 128], sizes = [8, 128], strides = [1, 1]} : vector<8x512xf32> to vector<8x128xf32>
    %cst_97 = arith.constant 5.000000e-01 : f32
    %232 = vector.broadcast %cst_97 : f32 to vector<8x128xf32>
    %233 = arith.mulf %232, %231 : vector<8x128xf32>
    %234 = math.tanh %233 : vector<8x128xf32>
    %cst_98 = arith.constant 5.000000e-01 : f32
    %235 = vector.broadcast %cst_98 : f32 to vector<8x128xf32>
    %236 = arith.mulf %235, %234 : vector<8x128xf32>
    %cst_99 = arith.constant 5.000000e-01 : f32
    %237 = vector.broadcast %cst_99 : f32 to vector<8x128xf32>
    %238 = arith.addf %236, %237 : vector<8x128xf32>
    %239 = vector.extract_strided_slice %222 {offsets = [0, 256], sizes = [8, 128], strides = [1, 1]} : vector<8x512xf32> to vector<8x128xf32>
    %240 = math.tanh %239 : vector<8x128xf32>
    %241 = vector.extract_strided_slice %222 {offsets = [0, 384], sizes = [8, 128], strides = [1, 1]} : vector<8x512xf32> to vector<8x128xf32>
    %cst_100 = arith.constant 5.000000e-01 : f32
    %242 = vector.broadcast %cst_100 : f32 to vector<8x128xf32>
    %243 = arith.mulf %242, %241 : vector<8x128xf32>
    %244 = math.tanh %243 : vector<8x128xf32>
    %cst_101 = arith.constant 5.000000e-01 : f32
    %245 = vector.broadcast %cst_101 : f32 to vector<8x128xf32>
    %246 = arith.mulf %245, %244 : vector<8x128xf32>
    %cst_102 = arith.constant 5.000000e-01 : f32
    %247 = vector.broadcast %cst_102 : f32 to vector<8x128xf32>
    %248 = arith.addf %246, %247 : vector<8x128xf32>
    %249 = arith.mulf %238, %216 : vector<8x128xf32>
    %250 = arith.mulf %230, %240 : vector<8x128xf32>
    %251 = arith.addf %249, %250 : vector<8x128xf32>
    %252 = math.tanh %251 : vector<8x128xf32>
    %253 = arith.mulf %248, %252 : vector<8x128xf32>
    %c48_103 = arith.constant 48 : index
    %c0_104 = arith.constant 0 : index
    %254 = vector.load %arg7[%c48_103, %c0_104] : memref<72x128xf32, #tpu.memory_space<vmem>>, vector<8x128xf32>
    tpu.vector_store %arg7[%c48_103, %c0_104], %253 {strides = array<i32>} : memref<72x128xf32, #tpu.memory_space<vmem>>, vector<8x128xf32>,
    %c56 = arith.constant 56 : index
    %c0_105 = arith.constant 0 : index
    %255 = vector.load %arg8[%c56, %c0_105] : memref<64x512xf32, #tpu.memory_space<vmem>>, vector<8x512xf32>
    %cst_106 = arith.constant dense<0.000000e+00> : vector<8x512xf32>
    %256 = tpu.matmul %253, %7, %cst_106 {dimension_numbers = #tpu.dot_dimension_numbers<[1], [0], [0], [1], [0, 0, 1, 1], [], []>} : vector<8x128xf32>, vector<128x512xf32>, vector<8x512xf32> -> vector<8x512xf32>
    %257 = arith.addf %255, %256 : vector<8x512xf32>
    %258 = vector.extract_strided_slice %257 {offsets = [0, 0], sizes = [8, 128], strides = [1, 1]} : vector<8x512xf32> to vector<8x128xf32>
    %cst_107 = arith.constant 5.000000e-01 : f32
    %259 = vector.broadcast %cst_107 : f32 to vector<8x128xf32>
    %260 = arith.mulf %259, %258 : vector<8x128xf32>
    %261 = math.tanh %260 : vector<8x128xf32>
    %cst_108 = arith.constant 5.000000e-01 : f32
    %262 = vector.broadcast %cst_108 : f32 to vector<8x128xf32>
    %263 = arith.mulf %262, %261 : vector<8x128xf32>
    %cst_109 = arith.constant 5.000000e-01 : f32
    %264 = vector.broadcast %cst_109 : f32 to vector<8x128xf32>
    %265 = arith.addf %263, %264 : vector<8x128xf32>
    %266 = vector.extract_strided_slice %257 {offsets = [0, 128], sizes = [8, 128], strides = [1, 1]} : vector<8x512xf32> to vector<8x128xf32>
    %cst_110 = arith.constant 5.000000e-01 : f32
    %267 = vector.broadcast %cst_110 : f32 to vector<8x128xf32>
    %268 = arith.mulf %267, %266 : vector<8x128xf32>
    %269 = math.tanh %268 : vector<8x128xf32>
    %cst_111 = arith.constant 5.000000e-01 : f32
    %270 = vector.broadcast %cst_111 : f32 to vector<8x128xf32>
    %271 = arith.mulf %270, %269 : vector<8x128xf32>
    %cst_112 = arith.constant 5.000000e-01 : f32
    %272 = vector.broadcast %cst_112 : f32 to vector<8x128xf32>
    %273 = arith.addf %271, %272 : vector<8x128xf32>
    %274 = vector.extract_strided_slice %257 {offsets = [0, 256], sizes = [8, 128], strides = [1, 1]} : vector<8x512xf32> to vector<8x128xf32>
    %275 = math.tanh %274 : vector<8x128xf32>
    %276 = vector.extract_strided_slice %257 {offsets = [0, 384], sizes = [8, 128], strides = [1, 1]} : vector<8x512xf32> to vector<8x128xf32>
    %cst_113 = arith.constant 5.000000e-01 : f32
    %277 = vector.broadcast %cst_113 : f32 to vector<8x128xf32>
    %278 = arith.mulf %277, %276 : vector<8x128xf32>
    %279 = math.tanh %278 : vector<8x128xf32>
    %cst_114 = arith.constant 5.000000e-01 : f32
    %280 = vector.broadcast %cst_114 : f32 to vector<8x128xf32>
    %281 = arith.mulf %280, %279 : vector<8x128xf32>
    %cst_115 = arith.constant 5.000000e-01 : f32
    %282 = vector.broadcast %cst_115 : f32 to vector<8x128xf32>
    %283 = arith.addf %281, %282 : vector<8x128xf32>
    %284 = arith.mulf %273, %251 : vector<8x128xf32>
    %285 = arith.mulf %265, %275 : vector<8x128xf32>
    %286 = arith.addf %284, %285 : vector<8x128xf32>
    %287 = math.tanh %286 : vector<8x128xf32>
    %288 = arith.mulf %283, %287 : vector<8x128xf32>
    %c56_116 = arith.constant 56 : index
    %c0_117 = arith.constant 0 : index
    %289 = vector.load %arg7[%c56_116, %c0_117] : memref<72x128xf32, #tpu.memory_space<vmem>>, vector<8x128xf32>
    tpu.vector_store %arg7[%c56_116, %c0_117], %288 {strides = array<i32>} : memref<72x128xf32, #tpu.memory_space<vmem>>, vector<8x128xf32>,
    %c64 = arith.constant 64 : index
    %c0_118 = arith.constant 0 : index
    %290 = vector.load %arg7[%c64, %c0_118] : memref<72x128xf32, #tpu.memory_space<vmem>>, vector<8x128xf32>
    tpu.vector_store %arg7[%c64, %c0_118], %286 {strides = array<i32>} : memref<72x128xf32, #tpu.memory_space<vmem>>, vector<8x128xf32>,
    return
  }
  func.func @transform_0(%arg0: i32) -> (i32, i32) {
    %c0_i32 = arith.constant 0 : i32
    %c0_i32_0 = arith.constant 0 : i32
    %c0_i32_1 = arith.constant 0 : i32
    return %c0_i32, %c0_i32_0 : i32, i32
  }
  func.func @transform_1(%arg0: i32) -> (i32, i32) {
    %c0_i32 = arith.constant 0 : i32
    %c0_i32_0 = arith.constant 0 : i32
    %c0_i32_1 = arith.constant 0 : i32
    return %c0_i32, %c0_i32_0 : i32, i32
  }
  func.func @transform_2(%arg0: i32) -> (i32, i32) {
    %c0_i32 = arith.constant 0 : i32
    %c0_i32_0 = arith.constant 0 : i32
    %c0_i32_1 = arith.constant 0 : i32
    return %c0_i32, %c0_i32_0 : i32, i32
  }
  func.func @transform_3(%arg0: i32) -> (i32, i32) {
    %c0_i32 = arith.constant 0 : i32
    %c0_i32_0 = arith.constant 0 : i32
    %c0_i32_1 = arith.constant 0 : i32
    return %c0_i32, %c0_i32_0 : i32, i32
  }
  func.func @transform_4(%arg0: i32) -> (i32, i32) {
    %c0_i32 = arith.constant 0 : i32
    %c0_i32_0 = arith.constant 0 : i32
    %c0_i32_1 = arith.constant 0 : i32
    return %c0_i32, %c0_i32_0 : i32, i32
  }
  func.func @transform_5(%arg0: i32) -> (i32, i32) {
    %c0_i32 = arith.constant 0 : i32
    %c0_i32_0 = arith.constant 0 : i32
    %c0_i32_1 = arith.constant 0 : i32
    return %c0_i32, %c0_i32_0 : i32, i32
  }
  func.func @transform_6(%arg0: i32) -> (i32, i32) {
    %c0_i32 = arith.constant 0 : i32
    %c0_i32_0 = arith.constant 0 : i32
    %c0_i32_1 = arith.constant 0 : i32
    return %c0_i32, %c0_i32_0 : i32, i32
  }
}

</mosaic_0001>

<bundles_post_ra>
// kernel: lstm_pallas.1
= control target key start
LH: loop header
LB: loop body
LE: loop exit
PB: predicated region body
PF: predicated region fallthrough
CT: control target
= control target key end

     0   :  { %11 = vsyncpa [#allocation4], 0  ;;  %s1985_s21 = smov [#allocation3]   ;;  %s3067_s0 = inlined_call_operand.vmem [shape: f32[64,10], index: 0, kind: input, shape index: {}]   ;;  %s3068_s1 = inlined_call_operand.vmem [shape: f32[8,128], index: 1, kind: input, shape index: {}]   ;;  %s3069_s2 = inlined_call_operand.vmem [shape: f32[8,128], index: 2, kind: input, shape index: {}]   ;;  %s3070_s3 = inlined_call_operand.vmem [shape: f32[10,512], index: 3, kind: input, shape index: {}]   ;;  %s3071_s4 = inlined_call_operand.hbm [shape: f32[128,512], index: 4, kind: input, shape index: {}]   ;;  %s3072_s5 = inlined_call_operand.vmem [shape: f32[1,512], index: 5, kind: input, shape index: {}]   ;;  %s3073_s6 = inlined_call_operand.vmem [shape: f32[72,128], index: 6, kind: output, shape index: {}]  }
   0x1   :  { %s25_s22 = sshll.u32 %s1985_s21, 4  ;;  %s26_s22 = int_to_ptr.vmem [resolvable:$true] %s25_s22 }
   0x2   :  { %s1971_s23 = scalar_lea.vmem %s26_s22, 8192  ;;  %p1976_p1 = scmp.lt.s32.totalorder %s26_s22, %s26_s22 }
   0x3   :  { %p1972_p0 = scmp.ne.s32.totalorder %s26_s22, %s1971_s23  ;;  %p1977_p2 = scmp.lt.s32.totalorder %s1971_s23, %s1971_s23 }
   0x5   :  { %p1978_p3 = por %p1977_p2, %p1976_p1 }
   0x7   :  { %p1979_p4 = pnand %p1978_p3, %p1972_p0 }
   0x9   :  { %1982 = shalt.err (!%p1979_p4)
}
   0xa   :  { %s1986_s24 = smov 512   ;;  %s1987_s25 = smov 32  }
   0xb   :  { %31 = dma.hbm_to_vmem [thread:$0]  %s3071_s4, 8192, %s26_s22, [#allocation4], %s1986_s24, %s1986_s24, %s1987_s25  }
   0xc   :  { %1983 = dma.done.wait [#allocation4], 8192  }
   0xd   :  { %1984 = vsyncadd [#allocation4], 4294959104  ;;  %v3074_v0 = vmov 0.0   ;;  %vm100_vm0 = vcmask 1041408   ;;  %v50_v1 = vld [vmem:[%s3070_s3 + $0x28] sm:$0x3] }
   0xe   :  { %177 = vmatprep.mubr.f32.mxu0 %v3074_v0  ;;  %290 = vmatprep.mubr.f32.mxu1 %v3074_v0  ;;  %v52_v2 = vld [vmem:[%s3070_s3 + $0x38] sm:$0x3]  ;;  %v49_v3 = vld [vmem:[%s3070_s3 + $0x20] sm:$0x3]  ;;  %v51_v4 = vld [vmem:[%s3070_s3 + $0x30] sm:$0x3] }
   0xf   :  { %1795 = vmatprep.subr.msk.mxu0 %vm100_vm0, %v50_v1  ;;  %1805 = vmatprep.subr.msk.mxu1 %vm100_vm0, %v52_v2  ;;  %v46_v5 = vld [vmem:[%s3070_s3 + $0x8] sm:$0xff]  ;;  %v48_v6 = vld [vmem:[%s3070_s3 + $0x18] sm:$0xff]  ;;  %v45_v7 = vld [vmem:[%s3070_s3] sm:$0xff]  ;;  %vm75_vm1 = vcmask 80896  }
  0x10   :  { %1796 = vmatpush1.msk.msra.mxu0 %vm100_vm0, %v49_v3  ;;  %1806 = vmatpush1.msk.msra.mxu1 %vm100_vm0, %v51_v4  ;;  %v47_v8 = vld [vmem:[%s3070_s3 + $0x10] sm:$0xff]  ;;  %v37_v9 = vld [vmem:[%s3067_s0] sm:$0xff]  ;;  %v2056_v10 = vld [vmem:[#allocation3 + $0x1e8] sm:$0xff] }
  0x11   :  { %143 = vmatprep.subr.mxu0 %v46_v5  ;;  %256 = vmatprep.subr.mxu1 %v48_v6  ;;  %3166 = vst [vmem:[#allocation6_spill] sm:$0xff] %v2056_v10  ;;  %v2058_v11 = vld [vmem:[#allocation3 + $0x1f8] sm:$0xff]  ;;  %v2060_v12 = vld [vmem:[#allocation3 + $0x1e0] sm:$0xff]  ;;  %v2062_v13 = vld [vmem:[#allocation3 + $0x1f0] sm:$0xff] }
  0x12   :  { %3167 = vst [vmem:[#allocation7_spill] sm:$0xff] %v2058_v11  ;;  %144 = vmatpush1.msra.mxu0 %v45_v7  ;;  %257 = vmatpush1.msra.mxu1 %v47_v8  ;;  %v2066_v14 = vld [vmem:[#allocation3 + $0x1c8] sm:$0xff]  ;;  %v2068_v15 = vld [vmem:[#allocation3 + $0x1d8] sm:$0xff]  ;;  %v2074_v16 = vld [vmem:[#allocation3 + $0x1c0] sm:$0xff] }
  0x13   :  { %1797 = vmatmul.mubr.msk.f32.vlgmr.msra.gmra.mxu0 %vm75_vm1, %v37_v9  ;;  %1807 = vmatmul.mubr.msk.f32.vlgmr.msra.gmra.mxu1 %vm75_vm1, %v37_v9  ;;  %v2076_v17 = vld [vmem:[#allocation3 + $0x1d0] sm:$0xff]  ;;  %v38_v18 = vld [vmem:[%s3067_s0 + $0x8] sm:$0xff]  ;;  %v2087_v20 = vld [vmem:[#allocation3 + $0x1b8] sm:$0xff] }
  0x14   :  { %441 = vmatprep.subr.mxu0 %v2056_v10  ;;  %512 = vmatprep.subr.mxu1 %v2058_v11  ;;  %v2085_v19 = vld [vmem:[#allocation3 + $0x1a8] sm:$0xff]  ;;  %v2091_v21 = vld [vmem:[#allocation3 + $0x1a0] sm:$0xff]  ;;  %v2093_v22 = vld [vmem:[#allocation3 + $0x1b0] sm:$0xff] }
  0x15   :  { %442 = vmatpush1.msra.mxu0 %v2060_v12  ;;  %513 = vmatpush1.msra.mxu1 %v2062_v13  ;;  %v2097_v23 = vld [vmem:[#allocation3 + $0x188] sm:$0xff]  ;;  %v2099_v24 = vld [vmem:[#allocation3 + $0x198] sm:$0xff]  ;;  %v2105_v25 = vld [vmem:[#allocation3 + $0x180] sm:$0xff] }
  0x16   :  { %443 = vmatprep.subr.mxu0 %v2066_v14  ;;  %514 = vmatprep.subr.mxu1 %v2068_v15  ;;  %v2107_v26 = vld [vmem:[#allocation3 + $0x190] sm:$0xff]  ;;  %v2116_v28 = vld [vmem:[#allocation3 + $0x168] sm:$0xff]  ;;  %v2118_v29 = vld [vmem:[#allocation3 + $0x178] sm:$0xff] }
  0x17   :  { %183 = vmatprep.mubr.f32.mxu0 %v3074_v0  ;;  %296 = vmatprep.mubr.f32.mxu1 %v3074_v0  ;;  %v39_v27 = vld [vmem:[%s3067_s0 + $0x10] sm:$0xff]  ;;  %v2122_v30 = vld [vmem:[#allocation3 + $0x160] sm:$0xff]  ;;  %v2128_v32 = vld [vmem:[#allocation3 + $0x148] sm:$0xff] }
  0x18   :  { %444 = vmatpush1.msra.mxu0 %v2074_v16  ;;  %515 = vmatpush1.msra.mxu1 %v2076_v17  ;;  %v2124_v31 = vld [vmem:[#allocation3 + $0x170] sm:$0xff]  ;;  %v2130_v33 = vld [vmem:[#allocation3 + $0x158] sm:$0xff]  ;;  %v2136_v34 = vld [vmem:[#allocation3 + $0x140] sm:$0xff] }
  0x19   :  { %1798 = vmatmul.mubr.msk.f32.gmra.mxu0 %vm75_vm1, %v38_v18  ;;  %1808 = vmatmul.mubr.msk.f32.gmra.mxu1 %vm75_vm1, %v38_v18  ;;  %v2138_v35 = vld [vmem:[#allocation3 + $0x150] sm:$0xff]  ;;  %v40_v36 = vld [vmem:[%s3067_s0 + $0x18] sm:$0xff]  ;;  %v2147_v37 = vld [vmem:[#allocation3 + $0x128] sm:$0xff] }
  0x1a   :  { %445 = vmatprep.subr.mxu0 %v2085_v19  ;;  %516 = vmatprep.subr.mxu1 %v2087_v20  ;;  %v2149_v38 = vld [vmem:[#allocation3 + $0x138] sm:$0xff]  ;;  %v2153_v39 = vld [vmem:[#allocation3 + $0x120] sm:$0xff]  ;;  %v2155_v40 = vld [vmem:[#allocation3 + $0x130] sm:$0xff] }
  0x1b   :  { %446 = vmatpush1.msra.mxu0 %v2091_v21  ;;  %517 = vmatpush1.msra.mxu1 %v2093_v22  ;;  %v2159_v41 = vld [vmem:[#allocation3 + $0x108] sm:$0xff]  ;;  %v2161_v42 = vld [vmem:[#allocation3 + $0x118] sm:$0xff]  ;;  %v2167_v43 = vld [vmem:[#allocation3 + $0x100] sm:$0xff] }
  0x1c   :  { %447 = vmatprep.subr.mxu0 %v2097_v23  ;;  %518 = vmatprep.subr.mxu1 %v2099_v24  ;;  %v2169_v44 = vld [vmem:[#allocation3 + $0x110] sm:$0xff]  ;;  %v41_v45 = vld [vmem:[%s3067_s0 + $0x20] sm:$0xff]  ;;  %v2178_v46 = vld [vmem:[#allocation3 + $0xe8] sm:$0xff] }
  0x1d   :  { %189 = vmatprep.mubr.f32.mxu0 %v3074_v0  ;;  %302 = vmatprep.mubr.f32.mxu1 %v3074_v0  ;;  %v2180_v47 = vld [vmem:[#allocation3 + $0xf8] sm:$0xff]  ;;  %v2184_v48 = vld [vmem:[#allocation3 + $0xe0] sm:$0xff]  ;;  %v2186_v49 = vld [vmem:[#allocation3 + $0xf0] sm:$0xff] }
  0x1e   :  { %448 = vmatpush1.msra.mxu0 %v2105_v25  ;;  %519 = vmatpush1.msra.mxu1 %v2107_v26  ;;  %v2190_v50 = vld [vmem:[#allocation3 + $0xc8] sm:$0xff]  ;;  %v2192_v51 = vld [vmem:[#allocation3 + $0xd8] sm:$0xff]  ;;  %v2198_v52 = vld [vmem:[#allocation3 + $0xc0] sm:$0xff] }
  0x1f   :  { %1799 = vmatmul.mubr.msk.f32.gmra.mxu0 %vm75_vm1, %v39_v27  ;;  %1809 = vmatmul.mubr.msk.f32.gmra.mxu1 %vm75_vm1, %v39_v27  ;;  %v2200_v53 = vld [vmem:[#allocation3 + $0xd0] sm:$0xff]  ;;  %v42_v54 = vld [vmem:[%s3067_s0 + $0x28] sm:$0xff]  ;;  %v2211_v56 = vld [vmem:[#allocation3 + $0xb8] sm:$0xff] }
  0x20   :  { %449 = vmatprep.subr.mxu0 %v2116_v28  ;;  %520 = vmatprep.subr.mxu1 %v2118_v29  ;;  %v2209_v55 = vld [vmem:[#allocation3 + $0xa8] sm:$0xff]  ;;  %v2215_v57 = vld [vmem:[#allocation3 + $0xa0] sm:$0xff]  ;;  %v2217_v58 = vld [vmem:[#allocation3 + $0xb0] sm:$0xff] }
  0x21   :  { %450 = vmatpush1.msra.mxu0 %v2122_v30  ;;  %521 = vmatpush1.msra.mxu1 %v2124_v31  ;;  %v2221_v59 = vld [vmem:[#allocation3 + $0x88] sm:$0xff]  ;;  %v2223_v60 = vld [vmem:[#allocation3 + $0x98] sm:$0xff]  ;;  %v2229_v61 = vld [vmem:[#allocation3 + $0x80] sm:$0xff] }
  0x22   :  { %451 = vmatprep.subr.mxu0 %v2128_v32  ;;  %522 = vmatprep.subr.mxu1 %v2130_v33  ;;  %3168 = vst [vmem:[#allocation8_spill] sm:$0xff] %v2221_v59  ;;  %3169 = vst [vmem:[#allocation9_spill] sm:$0xff] %v2223_v60  ;;  %v2231_v62 = vld [vmem:[#allocation3 + $0x90] sm:$0xff]  ;;  %v2240_v1 = vld [vmem:[#allocation3 + $0x68] sm:$0xff] }
  0x23   :  { %195 = vmatprep.mubr.f32.mxu0 %v3074_v0  ;;  %308 = vmatprep.mubr.f32.mxu1 %v3074_v0  ;;  %3170 = vst [vmem:[#allocation10_spill] sm:$0xff] %v2229_v61  ;;  %3171 = vst [vmem:[#allocation11_spill] sm:$0xff] %v2231_v62  ;;  %v43_v63 = vld [vmem:[%s3067_s0 + $0x30] sm:$0xff]  ;;  %v2242_v2 = vld [vmem:[#allocation3 + $0x78] sm:$0xff] }
  0x24   :  { %452 = vmatpush1.msra.mxu0 %v2136_v34  ;;  %523 = vmatpush1.msra.mxu1 %v2138_v35  ;;  %3172 = vst [vmem:[#allocation12_spill] sm:$0xff] %v2240_v1  ;;  %3173 = vst [vmem:[#allocation13_spill] sm:$0xff] %v2242_v2  ;;  %v2246_v3 = vld [vmem:[#allocation3 + $0x60] sm:$0xff]  ;;  %v2248_v4 = vld [vmem:[#allocation3 + $0x70] sm:$0xff] }
  0x25   :  { %1800 = vmatmul.mubr.msk.f32.gmra.mxu0 %vm75_vm1, %v40_v36  ;;  %1810 = vmatmul.mubr.msk.f32.gmra.mxu1 %vm75_vm1, %v40_v36  ;;  %3174 = vst [vmem:[#allocation14_spill] sm:$0xff] %v2246_v3  ;;  %3175 = vst [vmem:[#allocation15_spill] sm:$0xff] %v2248_v4  ;;  %v2252_v5 = vld [vmem:[#allocation3 + $0x48] sm:$0xff]  ;;  %v2254_v6 = vld [vmem:[#allocation3 + $0x58] sm:$0xff] }
  0x26   :  { %453 = vmatprep.subr.mxu0 %v2147_v37  ;;  %524 = vmatprep.subr.mxu1 %v2149_v38  ;;  %3176 = vst [vmem:[#allocation16_spill] sm:$0xff] %v2252_v5  ;;  %3177 = vst [vmem:[#allocation17_spill] sm:$0xff] %v2254_v6  ;;  %v2260_v7 = vld [vmem:[#allocation3 + $0x40] sm:$0xff]  ;;  %v2262_v8 = vld [vmem:[#allocation3 + $0x50] sm:$0xff] }
  0x27   :  { %454 = vmatpush1.msra.mxu0 %v2153_v39  ;;  %525 = vmatpush1.msra.mxu1 %v2155_v40  ;;  %3178 = vst [vmem:[#allocation18_spill] sm:$0xff] %v2260_v7  ;;  %3179 = vst [vmem:[#allocation19_spill] sm:$0xff] %v2262_v8  ;;  %v44_v9 = vld [vmem:[%s3067_s0 + $0x38] sm:$0xff]  ;;  %v2271_v18 = vld [vmem:[#allocation3 + $0x28] sm:$0xff] }
  0x28   :  { %455 = vmatprep.subr.mxu0 %v2159_v41  ;;  %526 = vmatprep.subr.mxu1 %v2161_v42  ;;  %3180 = vst [vmem:[#allocation20_spill] sm:$0xff] %v2271_v18  ;;  %v2273_v27 = vld [vmem:[#allocation3 + $0x38] sm:$0xff]  ;;  %v2277_v36 = vld [vmem:[#allocation3 + $0x20] sm:$0xff] }
  0x29   :  { %201 = vmatprep.mubr.f32.mxu0 %v3074_v0  ;;  %314 = vmatprep.mubr.f32.mxu1 %v3074_v0  ;;  %3181 = vst [vmem:[#allocation21_spill] sm:$0xff] %v2273_v27  ;;  %3182 = vst [vmem:[#allocation22_spill] sm:$0xff] %v2277_v36 }
  0x2a   :  { %456 = vmatpush1.msra.mxu0 %v2167_v43  ;;  %527 = vmatpush1.msra.mxu1 %v2169_v44 }
  0x2b   :  { %1801 = vmatmul.mubr.msk.f32.gmra.mxu0 %vm75_vm1, %v41_v45  ;;  %1811 = vmatmul.mubr.msk.f32.gmra.mxu1 %vm75_vm1, %v41_v45  ;;  %v2279_v45 = vld [vmem:[#allocation3 + $0x30] sm:$0xff] }
  0x2c   :  { %457 = vmatprep.subr.mxu0 %v2178_v46  ;;  %528 = vmatprep.subr.mxu1 %v2180_v47  ;;  %3183 = vst [vmem:[#allocation23_spill] sm:$0xff] %v2279_v45 }
  0x2d   :  { %458 = vmatpush1.msra.mxu0 %v2184_v48  ;;  %529 = vmatpush1.msra.mxu1 %v2186_v49 }
  0x2e   :  { %459 = vmatprep.subr.mxu0 %v2190_v50  ;;  %530 = vmatprep.subr.mxu1 %v2192_v51 }
  0x2f   :  { %207 = vmatprep.mubr.f32.mxu0 %v3074_v0  ;;  %320 = vmatprep.mubr.f32.mxu1 %v3074_v0 }
  0x30   :  { %460 = vmatpush1.msra.mxu0 %v2198_v52  ;;  %531 = vmatpush1.msra.mxu1 %v2200_v53 }
  0x31   :  { %1802 = vmatmul.mubr.msk.f32.gmra.mxu0 %vm75_vm1, %v42_v54  ;;  %1812 = vmatmul.mubr.msk.f32.gmra.mxu1 %vm75_vm1, %v42_v54  ;;  %v2283_v54 = vld [vmem:[#allocation3 + $0x8] sm:$0xff] }
  0x32   :  { %461 = vmatprep.subr.mxu0 %v2209_v55  ;;  %532 = vmatprep.subr.mxu1 %v2211_v56  ;;  %3184 = vst [vmem:[#allocation24_spill] sm:$0xff] %v2283_v54 }
  0x33   :  { %462 = vmatpush1.msra.mxu0 %v2215_v57  ;;  %533 = vmatpush1.msra.mxu1 %v2217_v58 }
  0x34   :  { %463 = vmatprep.subr.mxu0 %v2221_v59  ;;  %534 = vmatprep.subr.mxu1 %v2223_v60 }
  0x35   :  { %213 = vmatprep.mubr.f32.mxu0 %v3074_v0  ;;  %326 = vmatprep.mubr.f32.mxu1 %v3074_v0 }
  0x36   :  { %464 = vmatpush1.msra.mxu0 %v2229_v61  ;;  %535 = vmatpush1.msra.mxu1 %v2231_v62 }
  0x37   :  { %1803 = vmatmul.mubr.msk.f32.gmra.mxu0 %vm75_vm1, %v43_v63  ;;  %1813 = vmatmul.mubr.msk.f32.gmra.mxu1 %vm75_vm1, %v43_v63  ;;  %v2285_v63 = vld [vmem:[#allocation3 + $0x18] sm:$0xff] }
  0x38   :  { %465 = vmatprep.subr.mxu0 %v2240_v1  ;;  %536 = vmatprep.subr.mxu1 %v2242_v2  ;;  %3185 = vst [vmem:[#allocation25_spill] sm:$0xff] %v2285_v63 }
  0x39   :  { %466 = vmatpush1.msra.mxu0 %v2246_v3  ;;  %537 = vmatpush1.msra.mxu1 %v2248_v4 }
  0x3a   :  { %467 = vmatprep.subr.mxu0 %v2252_v5  ;;  %538 = vmatprep.subr.mxu1 %v2254_v6 }
  0x3b   :  { %219 = vmatprep.mubr.f32.mxu0 %v3074_v0  ;;  %332 = vmatprep.mubr.f32.mxu1 %v3074_v0  ;;  %v2289_v0 = vld [vmem:[#allocation3] sm:$0xff] }
  0x3c   :  { %468 = vmatpush1.msra.mxu0 %v2260_v7  ;;  %539 = vmatpush1.msra.mxu1 %v2262_v8  ;;  %3186 = vst [vmem:[#allocation26_spill] sm:$0xff] %v2289_v0  ;;  %v2293_v8 = vld [vmem:[#allocation3 + $0x10] sm:$0xff] }
  0x3d   :  { %1804 = vmatmul.mubr.msk.f32.gmra.mxu0 %vm75_vm1, %v44_v9  ;;  %1814 = vmatmul.mubr.msk.f32.gmra.mxu1 %vm75_vm1, %v44_v9  ;;  %3187 = vst [vmem:[#allocation27_spill] sm:$0xff] %v2293_v8  ;;  %v435_v9 = vld [vmem:[%s3068_s1] sm:$0xff] }
  0x3e   :  { %469 = vmatprep.subr.mxu0 %v2271_v18  ;;  %540 = vmatprep.subr.mxu1 %v2273_v27  ;;  %v3188_v18 = vmov 0.0  }
  0x3f   :  { %470 = vmatpush1.msra.mxu0 %v2277_v36  ;;  %541 = vmatpush1.msra.mxu1 %v2279_v45 }
  0x40   :  { %471 = vmatprep.subr.mxu0 %v2283_v54  ;;  %542 = vmatprep.subr.mxu1 %v2285_v63 }
  0x41   :  { %472 = vmatpush1.msra.mxu0 %v2289_v0  ;;  %505 = vmatprep.mubr.f32.mxu0 %v3188_v18 }
  0x42   :  { %543 = vmatpush1.msra.mxu1 %v2293_v8  ;;  %576 = vmatprep.mubr.f32.mxu1 %v3188_v18 }
  0x43   :  { %506 = vmatmul.mubr.f32.vlgmr.msra.gmra.mxu0 %v435_v9  ;;  %577 = vmatmul.mubr.f32.vlgmr.msra.gmra.mxu1 %v435_v9  ;;  %v3189_v9 = vld [vmem:[#allocation19_spill] sm:$0xff] }
  0x44   :  { %610 = vmatprep.subr.mxu0 %v2056_v10  ;;  %681 = vmatprep.subr.mxu1 %v2058_v11 }
  0x45   :  { %611 = vmatpush1.msra.mxu0 %v2060_v12  ;;  %682 = vmatpush1.msra.mxu1 %v2062_v13 }
  0x46   :  { %612 = vmatprep.subr.mxu0 %v2066_v14  ;;  %683 = vmatprep.subr.mxu1 %v2068_v15 }
  0x47   :  { %613 = vmatpush1.msra.mxu0 %v2074_v16  ;;  %684 = vmatpush1.msra.mxu1 %v2076_v17 }
  0x48   :  { %614 = vmatprep.subr.mxu0 %v2085_v19  ;;  %685 = vmatprep.subr.mxu1 %v2087_v20 }
  0x49   :  { %615 = vmatpush1.msra.mxu0 %v2091_v21  ;;  %686 = vmatpush1.msra.mxu1 %v2093_v22 }
  0x4a   :  { %616 = vmatprep.subr.mxu0 %v2097_v23  ;;  %687 = vmatprep.subr.mxu1 %v2099_v24 }
  0x4b   :  { %617 = vmatpush1.msra.mxu0 %v2105_v25  ;;  %688 = vmatpush1.msra.mxu1 %v2107_v26 }
  0x4c   :  { %618 = vmatprep.subr.mxu0 %v2116_v28  ;;  %689 = vmatprep.subr.mxu1 %v2118_v29 }
  0x4d   :  { %619 = vmatpush1.msra.mxu0 %v2122_v30  ;;  %690 = vmatpush1.msra.mxu1 %v2124_v31 }
  0x4e   :  { %620 = vmatprep.subr.mxu0 %v2128_v32  ;;  %691 = vmatprep.subr.mxu1 %v2130_v33 }
  0x4f   :  { %621 = vmatpush1.msra.mxu0 %v2136_v34  ;;  %692 = vmatpush1.msra.mxu1 %v2138_v35 }
  0x50   :  { %622 = vmatprep.subr.mxu0 %v2147_v37  ;;  %693 = vmatprep.subr.mxu1 %v2149_v38 }
  0x51   :  { %623 = vmatpush1.msra.mxu0 %v2153_v39  ;;  %694 = vmatpush1.msra.mxu1 %v2155_v40 }
  0x52   :  { %624 = vmatprep.subr.mxu0 %v2159_v41  ;;  %695 = vmatprep.subr.mxu1 %v2161_v42 }
  0x53   :  { %625 = vmatpush1.msra.mxu0 %v2167_v43  ;;  %696 = vmatpush1.msra.mxu1 %v2169_v44 }
  0x54   :  { %626 = vmatprep.subr.mxu0 %v2178_v46  ;;  %697 = vmatprep.subr.mxu1 %v2180_v47 }
  0x55   :  { %627 = vmatpush1.msra.mxu0 %v2184_v48  ;;  %698 = vmatpush1.msra.mxu1 %v2186_v49 }
  0x56   :  { %628 = vmatprep.subr.mxu0 %v2190_v50  ;;  %699 = vmatprep.subr.mxu1 %v2192_v51 }
  0x57   :  { %629 = vmatpush1.msra.mxu0 %v2198_v52  ;;  %700 = vmatpush1.msra.mxu1 %v2200_v53 }
  0x58   :  { %630 = vmatprep.subr.mxu0 %v2209_v55  ;;  %701 = vmatprep.subr.mxu1 %v2211_v56 }
  0x59   :  { %631 = vmatpush1.msra.mxu0 %v2215_v57  ;;  %702 = vmatpush1.msra.mxu1 %v2217_v58 }
  0x5a   :  { %632 = vmatprep.subr.mxu0 %v2221_v59  ;;  %703 = vmatprep.subr.mxu1 %v2223_v60  ;;  %v3190_v60 = vld [vmem:[#allocation20_spill] sm:$0xff] }
  0x5b   :  { %633 = vmatpush1.msra.mxu0 %v2229_v61  ;;  %704 = vmatpush1.msra.mxu1 %v2231_v62 }
  0x5c   :  { %634 = vmatprep.subr.mxu0 %v2240_v1  ;;  %705 = vmatprep.subr.mxu1 %v2242_v2 }
  0x5d   :  { %635 = vmatpush1.msra.mxu0 %v2246_v3  ;;  %706 = vmatpush1.msra.mxu1 %v2248_v4 }
  0x5e   :  { %636 = vmatprep.subr.mxu0 %v2252_v5  ;;  %707 = vmatprep.subr.mxu1 %v2254_v6 }
  0x5f   :  { %637 = vmatpush1.msra.mxu0 %v2260_v7  ;;  %708 = vmatpush1.msra.mxu1 %v3189_v9 }
  0x60   :  { %638 = vmatprep.subr.mxu0 %v3190_v60  ;;  %709 = vmatprep.subr.mxu1 %v2273_v27  ;;  %v55_v27 = vlaneseq }
  0x61   :  { %639 = vmatpush1.msra.mxu0 %v2277_v36  ;;  %710 = vmatpush1.msra.mxu1 %v2279_v45 }
  0x62   :  { %640 = vmatprep.subr.mxu0 %v2283_v54  ;;  %711 = vmatprep.subr.mxu1 %v2285_v63  ;;  %v56_v36 = vshrl.u32 %v55_v27, 7 }
  0x63   :  { %641 = vmatpush1.msra.mxu0 %v2289_v0  ;;  %674 = vmatprep.mubr.f32.mxu0 %v3188_v18  ;;  %v53_v0 = vld [vmem:[%s3072_s5] sm:$0xf] }
  0x64   :  { %712 = vmatpush1.msra.mxu1 %v2293_v8  ;;  %745 = vmatprep.mubr.f32.mxu1 %v3188_v18  ;;  %v57_v54 = vsub.s32 0, %v56_v36  ;;  %v65_v63 = vsub.s32 2, %v56_v36  ;;  %v61_v18 = vsub.s32 1, %v56_v36 }
  0x65   :  { %779 = vmatprep.subr.mxu0 %v2056_v10  ;;  %850 = vmatprep.subr.mxu1 %v2058_v11  ;;  %v69_v10 = vsub.s32 3, %v56_v36 }
  0x66   :  { %v58_v7 = vrot.slane %v53_v0, %v57_v54  ;;  %v2383_v11 = vrot.slane %v53_v0, %v65_v63  ;;  %v62_v5 = vrot.slane %v53_v0, %v61_v18 }
  0x67   :  { %v2385_v4 = vrot.slane %v53_v0, %v69_v10 }
  0xd3   :  { %v2372_v60 = vpop.f32.mrf.mxu0  ;;  %v2374_v45 = vpop.f32.mrf.mxu1 }
  0xd5   :  { %v2379_v9 = vpop.f32.mrf.mxu0  ;;  %v2381_v8 = vpop.f32.mrf.mxu1 }
  0xd9   :  { %v185_v27 = vpop.f32.mrf.mxu0  ;;  %v298_v6 = vpop.f32.mrf.mxu1 }
  0xda   :  { %v2387_v3 = vadd.f32 %v185_v27, %v58_v7  ;;  %v2390_v2 = vadd.f32 %v298_v6, %v2383_v11 }
  0xdb   :  { %v187_v1 = vpop.f32.mrf.mxu0  ;;  %v300_v62 = vpop.f32.mrf.mxu1 }
  0xdc   :  { %3191 = vst [vmem:[#allocation28_spill] sm:$0xff] %v2387_v3  ;;  %3192 = vst [vmem:[#allocation29_spill] sm:$0xff] %v2390_v2  ;;  %v2392_v61 = vadd.f32 %v187_v1, %v62_v5  ;;  %v2395_v59 = vadd.f32 %v300_v62, %v2385_v4 }
  0xde   :  { %3193 = vst [vmem:[#allocation30_spill] sm:$0xff] %v2392_v61  ;;  %3194 = vst [vmem:[#allocation31_spill] sm:$0xff] %v2395_v59 }
  0xdf   :  { %v191_v36 = vpop.f32.mrf.mxu0  ;;  %v304_v54 = vpop.f32.mrf.mxu1 }
  0xe0   :  { %v2397_v63 = vadd.f32 %v191_v36, %v58_v7  ;;  %v2400_v18 = vadd.f32 %v304_v54, %v2383_v11 }
  0xe1   :  { %v193_v0 = vpop.f32.mrf.mxu0  ;;  %v306_v10 = vpop.f32.mrf.mxu1 }
  0xe2   :  { %3195 = vst [vmem:[#allocation32_spill] sm:$0xff] %v2397_v63  ;;  %3196 = vst [vmem:[#allocation33_spill] sm:$0xff] %v2400_v18  ;;  %v2402_v27 = vadd.f32 %v193_v0, %v62_v5  ;;  %v2405_v6 = vadd.f32 %v306_v10, %v2385_v4 }
  0xe4   :  { %3197 = vst [vmem:[#allocation34_spill] sm:$0xff] %v2402_v27  ;;  %3198 = vst [vmem:[#allocation35_spill] sm:$0xff] %v2405_v6 }
  0xe5   :  { %v197_v2 = vpop.f32.mrf.mxu0  ;;  %v310_v1 = vpop.f32.mrf.mxu1 }
  0xe6   :  { %v2407_v61 = vadd.f32 %v197_v2, %v58_v7  ;;  %v2410_v62 = vadd.f32 %v310_v1, %v2383_v11 }
  0xe7   :  { %v199_v59 = vpop.f32.mrf.mxu0  ;;  %v312_v36 = vpop.f32.mrf.mxu1 }
  0xe8   :  { %3199 = vst [vmem:[#allocation36_spill] sm:$0xff] %v2407_v61  ;;  %3200 = vst [vmem:[#allocation37_spill] sm:$0xff] %v2410_v62  ;;  %v2412_v63 = vadd.f32 %v199_v59, %v62_v5  ;;  %v2415_v54 = vadd.f32 %v312_v36, %v2385_v4 }
  0xea   :  { %3201 = vst [vmem:[#allocation38_spill] sm:$0xff] %v2412_v63  ;;  %3202 = vst [vmem:[#allocation39_spill] sm:$0xff] %v2415_v54 }
  0xeb   :  { %v203_v18 = vpop.f32.mrf.mxu0  ;;  %v316_v0 = vpop.f32.mrf.mxu1 }
  0xec   :  { %v2417_v27 = vadd.f32 %v203_v18, %v58_v7  ;;  %v2420_v10 = vadd.f32 %v316_v0, %v2383_v11 }
  0xed   :  { %v205_v6 = vpop.f32.mrf.mxu0  ;;  %v318_v2 = vpop.f32.mrf.mxu1 }
  0xee   :  { %3203 = vst [vmem:[#allocation40_spill] sm:$0xff] %v2417_v27  ;;  %3204 = vst [vmem:[#allocation41_spill] sm:$0xff] %v2420_v10  ;;  %v2422_v61 = vadd.f32 %v205_v6, %v62_v5  ;;  %v2425_v1 = vadd.f32 %v318_v2, %v2385_v4 }
  0xf0   :  { %3205 = vst [vmem:[#allocation42_spill] sm:$0xff] %v2422_v61  ;;  %3206 = vst [vmem:[#allocation43_spill] sm:$0xff] %v2425_v1 }
  0xf1   :  { %v209_v62 = vpop.f32.mrf.mxu0  ;;  %v322_v59 = vpop.f32.mrf.mxu1 }
  0xf2   :  { %v2427_v63 = vadd.f32 %v209_v62, %v58_v7  ;;  %v2430_v36 = vadd.f32 %v322_v59, %v2383_v11 }
  0xf3   :  { %v211_v54 = vpop.f32.mrf.mxu0  ;;  %v324_v18 = vpop.f32.mrf.mxu1 }
  0xf4   :  { %3207 = vst [vmem:[#allocation44_spill] sm:$0xff] %v2427_v63  ;;  %3208 = vst [vmem:[#allocation45_spill] sm:$0xff] %v2430_v36  ;;  %v2432_v27 = vadd.f32 %v211_v54, %v62_v5  ;;  %v2435_v0 = vadd.f32 %v324_v18, %v2385_v4 }
  0xf6   :  { %3209 = vst [vmem:[#allocation46_spill] sm:$0xff] %v2432_v27  ;;  %3210 = vst [vmem:[#allocation47_spill] sm:$0xff] %v2435_v0 }
  0xf7   :  { %v215_v10 = vpop.f32.mrf.mxu0  ;;  %v328_v6 = vpop.f32.mrf.mxu1 }
  0xf8   :  { %v2437_v61 = vadd.f32 %v215_v10, %v58_v7  ;;  %v2440_v2 = vadd.f32 %v328_v6, %v2383_v11 }
  0xf9   :  { %v217_v1 = vpop.f32.mrf.mxu0  ;;  %v330_v62 = vpop.f32.mrf.mxu1 }
  0xfa   :  { %3211 = vst [vmem:[#allocation48_spill] sm:$0xff] %v2437_v61  ;;  %3212 = vst [vmem:[#allocation49_spill] sm:$0xff] %v2440_v2  ;;  %v2442_v63 = vadd.f32 %v217_v1, %v62_v5  ;;  %v2445_v59 = vadd.f32 %v330_v62, %v2385_v4  ;;  %v180_v1 = vadd.f32 %v2372_v60, %v58_v7 }
  0xfb   :  { %v182_v62 = vadd.f32 %v2379_v9, %v62_v5 }
  0xfc   :  { %3213 = vst [vmem:[#allocation50_spill] sm:$0xff] %v2442_v63  ;;  %3214 = vst [vmem:[#allocation51_spill] sm:$0xff] %v2445_v59 }
  0xfd   :  { %v221_v36 = vpop.f32.mrf.mxu0  ;;  %v334_v54 = vpop.f32.mrf.mxu1 }
  0xfe   :  { %v2447_v27 = vadd.f32 %v221_v36, %v58_v7  ;;  %v2450_v18 = vadd.f32 %v334_v54, %v2383_v11  ;;  %v293_v54 = vadd.f32 %v2374_v45, %v2383_v11  ;;  %v436_v11 = vld [vmem:[%s3069_s2] sm:$0xff] }
  0xff   :  { %v223_v0 = vpop.f32.mrf.mxu0  ;;  %v336_v10 = vpop.f32.mrf.mxu1 }
 0x100   :  { %3215 = vst [vmem:[#allocation52_spill] sm:$0xff] %v2447_v27  ;;  %3216 = vst [vmem:[#allocation53_spill] sm:$0xff] %v2450_v18  ;;  %v2452_v61 = vadd.f32 %v223_v0, %v62_v5  ;;  %v2455_v6 = vadd.f32 %v336_v10, %v2385_v4  ;;  %v295_v10 = vadd.f32 %v2381_v8, %v2385_v4 }
 0x102   :  { %3217 = vst [vmem:[#allocation54_spill] sm:$0xff] %v2452_v61  ;;  %3218 = vst [vmem:[#allocation55_spill] sm:$0xff] %v2455_v6  ;;  %v3239_v6 = vld [vmem:[#allocation27_spill] sm:$0xff] }
 0x103   :  { %v507_v2 = vpop.f32.mrf.mxu0  ;;  %v578_v27 = vpop.f32.mrf.mxu1 }
 0x104   :  { %v583_v59 = vadd.f32 %v507_v2, %v180_v1  ;;  %v585_v0 = vadd.f32 %v578_v27, %v293_v54  ;;  %v3219_v54 = vld [vmem:[#allocation8_spill] sm:$0xff] }
 0x105   :  { %v509_v63 = vpop.f32.mrf.mxu0  ;;  %v580_v61 = vpop.f32.mrf.mxu1 }
 0x106   :  { %v587_v3 = vmul.f32 0.5, %v583_v59  ;;  %v584_v36 = vadd.f32 %v509_v63, %v182_v62  ;;  %v586_v60 = vadd.f32 %v580_v61, %v295_v10  ;;  %v3221_v10 = vld [vmem:[#allocation10_spill] sm:$0xff] }
 0x108   :  { %1819 = vtanh.f32 %v587_v3  ;;  %v591_v18 = vmul.f32 0.5, %v584_v36  ;;  %v596_v7 = vmul.f32 0.5, %v586_v60  ;;  %v3222_v60 = vld [vmem:[#allocation11_spill] sm:$0xff] }
 0x10a   :  { %1821 = vtanh.f32 %v591_v18 }
 0x10b   :  { %1823 = vtanh.f32 %v585_v0  ;;  %v3220_v0 = vld [vmem:[#allocation9_spill] sm:$0xff] }
 0x10c   :  { %1825 = vtanh.f32 %v596_v7  ;;  %v3223_v7 = vld [vmem:[#allocation12_spill] sm:$0xff] }
 0x115   :  { %v1820_v5 = vpop.eup %1819 }
 0x116   :  { %v589_v9 = vmul.f32 0.5, %v1820_v5  ;;  %v3224_v5 = vld [vmem:[#allocation13_spill] sm:$0xff] }
 0x117   :  { %v1822_v2 = vpop.eup %1821 }
 0x118   :  { %v590_v59 = vadd.f32 0.5, %v589_v9  ;;  %v593_v63 = vmul.f32 0.5, %v1822_v2  ;;  %v1824_v45 = vpop.eup %1823  ;;  %v3225_v9 = vld [vmem:[#allocation14_spill] sm:$0xff]  ;;  %v3226_v2 = vld [vmem:[#allocation15_spill] sm:$0xff] }
 0x119   :  { %v1826_v61 = vpop.eup %1825 }
 0x11a   :  { %v594_v3 = vadd.f32 0.5, %v593_v63  ;;  %v601_v18 = vmul.f32 %v1824_v45, %v590_v59  ;;  %v598_v4 = vmul.f32 0.5, %v1826_v61  ;;  %v3227_v59 = vld [vmem:[#allocation16_spill] sm:$0xff]  ;;  %v3228_v63 = vld [vmem:[#allocation17_spill] sm:$0xff]  ;;  %v3234_v61 = vld [vmem:[#allocation23_spill] sm:$0xff] }
 0x11b   :  { %v3231_v45 = vld [vmem:[#allocation20_spill] sm:$0xff] }
 0x11c   :  { %v600_v27 = vmul.f32 %v594_v3, %v436_v11  ;;  %v599_v8 = vadd.f32 0.5, %v598_v4  ;;  %v3229_v11 = vld [vmem:[#allocation18_spill] sm:$0xff]  ;;  %v3230_v3 = vld [vmem:[#allocation19_spill] sm:$0xff]  ;;  %v3235_v4 = vld [vmem:[#allocation24_spill] sm:$0xff] }
 0x11e   :  { %v2466_v1 = vadd.f32 %v601_v18, %v600_v27  ;;  %v3232_v27 = vld [vmem:[#allocation21_spill] sm:$0xff]  ;;  %v3233_v18 = vld [vmem:[#allocation22_spill] sm:$0xff] }
 0x120   :  { %1827 = vtanh.f32 %v2466_v1 }
 0x12d   :  { %v1828_v62 = vpop.eup %1827 }
 0x12e   :  { %v604_v36 = vmul.f32 %v1828_v62, %v599_v8  ;;  %v3236_v8 = vld [vmem:[#allocation25_spill] sm:$0xff]  ;;  %v3237_v62 = vld [vmem:[#allocation26_spill] sm:$0xff] }
 0x130   :  { %605 = vst [vmem:[%s3073_s6] sm:$0xff] %v604_v36  ;;  %675 = vmatmul.mubr.f32.vlgmr.msra.gmra.mxu0 %v604_v36  ;;  %746 = vmatmul.mubr.f32.vlgmr.msra.gmra.mxu1 %v604_v36  ;;  %v3238_v36 = vmov 0.0  }
 0x131   :  { %780 = vmatpush1.msra.mxu0 %v2060_v12  ;;  %851 = vmatpush1.msra.mxu1 %v2062_v13 }
 0x132   :  { %781 = vmatprep.subr.mxu0 %v2066_v14  ;;  %852 = vmatprep.subr.mxu1 %v2068_v15 }
 0x133   :  { %782 = vmatpush1.msra.mxu0 %v2074_v16  ;;  %853 = vmatpush1.msra.mxu1 %v2076_v17 }
 0x134   :  { %783 = vmatprep.subr.mxu0 %v2085_v19  ;;  %854 = vmatprep.subr.mxu1 %v2087_v20 }
 0x135   :  { %784 = vmatpush1.msra.mxu0 %v2091_v21  ;;  %855 = vmatpush1.msra.mxu1 %v2093_v22 }
 0x136   :  { %785 = vmatprep.subr.mxu0 %v2097_v23  ;;  %856 = vmatprep.subr.mxu1 %v2099_v24 }
 0x137   :  { %786 = vmatpush1.msra.mxu0 %v2105_v25  ;;  %857 = vmatpush1.msra.mxu1 %v2107_v26 }
 0x138   :  { %787 = vmatprep.subr.mxu0 %v2116_v28  ;;  %858 = vmatprep.subr.mxu1 %v2118_v29 }
 0x139   :  { %788 = vmatpush1.msra.mxu0 %v2122_v30  ;;  %859 = vmatpush1.msra.mxu1 %v2124_v31 }
 0x13a   :  { %789 = vmatprep.subr.mxu0 %v2128_v32  ;;  %860 = vmatprep.subr.mxu1 %v2130_v33 }
 0x13b   :  { %790 = vmatpush1.msra.mxu0 %v2136_v34  ;;  %861 = vmatpush1.msra.mxu1 %v2138_v35 }
 0x13c   :  { %791 = vmatprep.subr.mxu0 %v2147_v37  ;;  %862 = vmatprep.subr.mxu1 %v2149_v38 }
 0x13d   :  { %792 = vmatpush1.msra.mxu0 %v2153_v39  ;;  %863 = vmatpush1.msra.mxu1 %v2155_v40 }
 0x13e   :  { %793 = vmatprep.subr.mxu0 %v2159_v41  ;;  %864 = vmatprep.subr.mxu1 %v2161_v42 }
 0x13f   :  { %794 = vmatpush1.msra.mxu0 %v2167_v43  ;;  %865 = vmatpush1.msra.mxu1 %v2169_v44 }
 0x140   :  { %795 = vmatprep.subr.mxu0 %v2178_v46  ;;  %866 = vmatprep.subr.mxu1 %v2180_v47 }
 0x141   :  { %796 = vmatpush1.msra.mxu0 %v2184_v48  ;;  %867 = vmatpush1.msra.mxu1 %v2186_v49 }
 0x142   :  { %797 = vmatprep.subr.mxu0 %v2190_v50  ;;  %868 = vmatprep.subr.mxu1 %v2192_v51 }
 0x143   :  { %798 = vmatpush1.msra.mxu0 %v2198_v52  ;;  %869 = vmatpush1.msra.mxu1 %v2200_v53 }
 0x144   :  { %799 = vmatprep.subr.mxu0 %v2209_v55  ;;  %870 = vmatprep.subr.mxu1 %v2211_v56 }
 0x145   :  { %800 = vmatpush1.msra.mxu0 %v2215_v57  ;;  %871 = vmatpush1.msra.mxu1 %v2217_v58 }
 0x146   :  { %801 = vmatprep.subr.mxu0 %v3219_v54  ;;  %872 = vmatprep.subr.mxu1 %v3220_v0 }
 0x147   :  { %802 = vmatpush1.msra.mxu0 %v3221_v10  ;;  %873 = vmatpush1.msra.mxu1 %v3222_v60 }
 0x148   :  { %803 = vmatprep.subr.mxu0 %v3223_v7  ;;  %874 = vmatprep.subr.mxu1 %v3224_v5 }
 0x149   :  { %804 = vmatpush1.msra.mxu0 %v3225_v9  ;;  %875 = vmatpush1.msra.mxu1 %v3226_v2 }
 0x14a   :  { %805 = vmatprep.subr.mxu0 %v3227_v59  ;;  %876 = vmatprep.subr.mxu1 %v3228_v63  ;;  %v3243_v59 = vld [vmem:[#allocation30_spill] sm:$0xff] }
 0x14b   :  { %806 = vmatpush1.msra.mxu0 %v3229_v11  ;;  %877 = vmatpush1.msra.mxu1 %v3230_v3  ;;  %v3240_v3 = vld [vmem:[#allocation6_spill] sm:$0xff] }
 0x14c   :  { %807 = vmatprep.subr.mxu0 %v3231_v45  ;;  %878 = vmatprep.subr.mxu1 %v3232_v27  ;;  %v3241_v45 = vld [vmem:[#allocation7_spill] sm:$0xff] }
 0x14d   :  { %808 = vmatpush1.msra.mxu0 %v3233_v18  ;;  %879 = vmatpush1.msra.mxu1 %v3234_v61  ;;  %v3242_v18 = vld [vmem:[#allocation28_spill] sm:$0xff] }
 0x14e   :  { %809 = vmatprep.subr.mxu0 %v3235_v4  ;;  %880 = vmatprep.subr.mxu1 %v3236_v8 }
 0x14f   :  { %810 = vmatpush1.msra.mxu0 %v3237_v62  ;;  %843 = vmatprep.mubr.f32.mxu0 %v3238_v36  ;;  %v3244_v62 = vld [vmem:[#allocation29_spill] sm:$0xff] }
 0x150   :  { %881 = vmatpush1.msra.mxu1 %v3239_v6  ;;  %914 = vmatprep.mubr.f32.mxu1 %v3238_v36  ;;  %v3245_v36 = vld [vmem:[#allocation31_spill] sm:$0xff] }
 0x151   :  { %948 = vmatprep.subr.mxu0 %v3240_v3  ;;  %1019 = vmatprep.subr.mxu1 %v3241_v45 }
 0x1f0   :  { %v676_v27 = vpop.f32.mrf.mxu0  ;;  %v747_v61 = vpop.f32.mrf.mxu1 }
 0x1f1   :  { %v752_v11 = vadd.f32 %v676_v27, %v3242_v18  ;;  %v754_v2 = vadd.f32 %v747_v61, %v3244_v62 }
 0x1f2   :  { %v678_v63 = vpop.f32.mrf.mxu0  ;;  %v749_v6 = vpop.f32.mrf.mxu1 }
 0x1f3   :  { %v756_v4 = vmul.f32 0.5, %v752_v11  ;;  %v753_v8 = vadd.f32 %v678_v63, %v3243_v59  ;;  %v755_v5 = vadd.f32 %v749_v6, %v3245_v36  ;;  %v3270_v36 = vld [vmem:[#allocation33_spill] sm:$0xff] }
 0x1f5   :  { %1829 = vtanh.f32 %v756_v4  ;;  %v760_v9 = vmul.f32 0.5, %v753_v8  ;;  %v765_v3 = vmul.f32 0.5, %v755_v5  ;;  %v3269_v8 = vld [vmem:[#allocation34_spill] sm:$0xff] }
 0x1f7   :  { %1831 = vtanh.f32 %v760_v9 }
 0x1f8   :  { %1833 = vtanh.f32 %v754_v2 }
 0x1f9   :  { %1835 = vtanh.f32 %v765_v3 }
 0x202   :  { %v1830_v7 = vpop.eup %1829 }
 0x203   :  { %v758_v45 = vmul.f32 0.5, %v1830_v7 }
 0x204   :  { %v1832_v60 = vpop.eup %1831 }
 0x205   :  { %v759_v10 = vadd.f32 0.5, %v758_v45  ;;  %v762_v27 = vmul.f32 0.5, %v1832_v60  ;;  %v1834_v18 = vpop.eup %1833 }
 0x206   :  { %v1836_v9 = vpop.eup %1835 }
 0x207   :  { %v763_v11 = vadd.f32 0.5, %v762_v27  ;;  %v770_v0 = vmul.f32 %v1834_v18, %v759_v10  ;;  %v767_v2 = vmul.f32 0.5, %v1836_v9  ;;  %v3271_v18 = vld [vmem:[#allocation35_spill] sm:$0xff] }
 0x209   :  { %v769_v59 = vmul.f32 %v763_v11, %v2466_v1  ;;  %v768_v61 = vadd.f32 0.5, %v767_v2 }
 0x20b   :  { %v2543_v63 = vadd.f32 %v770_v0, %v769_v59  ;;  %v3268_v0 = vld [vmem:[#allocation32_spill] sm:$0xff] }
 0x20d   :  { %1837 = vtanh.f32 %v2543_v63 }
 0x21a   :  { %v1838_v6 = vpop.eup %1837 }
 0x21b   :  { %v773_v5 = vmul.f32 %v1838_v6, %v768_v61 }
 0x21d   :  { %774 = vst [vmem:[%s3073_s6 + $0x8] sm:$0xff] %v773_v5  ;;  %844 = vmatmul.mubr.f32.vlgmr.msra.gmra.mxu0 %v773_v5  ;;  %915 = vmatmul.mubr.f32.vlgmr.msra.gmra.mxu1 %v773_v5 }
 0x21e   :  { %949 = vmatpush1.msra.mxu0 %v2060_v12  ;;  %1020 = vmatpush1.msra.mxu1 %v2062_v13  ;;  %v3246_v12 = vld [vmem:[#allocation9_spill] sm:$0xff]  ;;  %v3247_v13 = vld [vmem:[#allocation10_spill] sm:$0xff] }
 0x21f   :  { %950 = vmatprep.subr.mxu0 %v2066_v14  ;;  %1021 = vmatprep.subr.mxu1 %v2068_v15  ;;  %v3248_v14 = vld [vmem:[#allocation11_spill] sm:$0xff]  ;;  %v3249_v15 = vld [vmem:[#allocation12_spill] sm:$0xff] }
 0x220   :  { %951 = vmatpush1.msra.mxu0 %v2074_v16  ;;  %1022 = vmatpush1.msra.mxu1 %v2076_v17  ;;  %v3250_v16 = vld [vmem:[#allocation13_spill] sm:$0xff]  ;;  %v3251_v17 = vld [vmem:[#allocation14_spill] sm:$0xff] }
 0x221   :  { %952 = vmatprep.subr.mxu0 %v2085_v19  ;;  %1023 = vmatprep.subr.mxu1 %v2087_v20  ;;  %v3252_v19 = vld [vmem:[#allocation15_spill] sm:$0xff]  ;;  %v3253_v20 = vld [vmem:[#allocation16_spill] sm:$0xff] }
 0x222   :  { %953 = vmatpush1.msra.mxu0 %v2091_v21  ;;  %1024 = vmatpush1.msra.mxu1 %v2093_v22  ;;  %v3254_v21 = vld [vmem:[#allocation17_spill] sm:$0xff]  ;;  %v3255_v22 = vld [vmem:[#allocation18_spill] sm:$0xff] }
 0x223   :  { %954 = vmatprep.subr.mxu0 %v2097_v23  ;;  %1025 = vmatprep.subr.mxu1 %v2099_v24  ;;  %v3256_v23 = vld [vmem:[#allocation19_spill] sm:$0xff]  ;;  %v3257_v24 = vld [vmem:[#allocation20_spill] sm:$0xff] }
 0x224   :  { %955 = vmatpush1.msra.mxu0 %v2105_v25  ;;  %1026 = vmatpush1.msra.mxu1 %v2107_v26  ;;  %v3258_v25 = vld [vmem:[#allocation21_spill] sm:$0xff]  ;;  %v3259_v26 = vld [vmem:[#allocation22_spill] sm:$0xff] }
 0x225   :  { %956 = vmatprep.subr.mxu0 %v2116_v28  ;;  %1027 = vmatprep.subr.mxu1 %v2118_v29  ;;  %v3260_v28 = vld [vmem:[#allocation23_spill] sm:$0xff]  ;;  %v3261_v29 = vld [vmem:[#allocation24_spill] sm:$0xff] }
 0x226   :  { %957 = vmatpush1.msra.mxu0 %v2122_v30  ;;  %1028 = vmatpush1.msra.mxu1 %v2124_v31  ;;  %v3262_v30 = vld [vmem:[#allocation25_spill] sm:$0xff]  ;;  %v3263_v31 = vld [vmem:[#allocation26_spill] sm:$0xff] }
 0x227   :  { %958 = vmatprep.subr.mxu0 %v2128_v32  ;;  %1029 = vmatprep.subr.mxu1 %v2130_v33  ;;  %v3264_v32 = vmov 0.0   ;;  %v3265_v33 = vld [vmem:[#allocation27_spill] sm:$0xff] }
 0x228   :  { %959 = vmatpush1.msra.mxu0 %v2136_v34  ;;  %1030 = vmatpush1.msra.mxu1 %v2138_v35  ;;  %v2613_v34 = vld [vmem:[#allocation3 + $0x1e8] sm:$0xff]  ;;  %v2616_v35 = vld [vmem:[#allocation3 + $0x1f8] sm:$0xff] }
 0x229   :  { %960 = vmatprep.subr.mxu0 %v2147_v37  ;;  %1031 = vmatprep.subr.mxu1 %v2149_v38  ;;  %3266 = vst [vmem:[#allocation8_spill] sm:$0xff] %v2613_v34  ;;  %3267 = vst [vmem:[#allocation6_spill] sm:$0xff] %v2616_v35 }
 0x22a   :  { %961 = vmatpush1.msra.mxu0 %v2153_v39  ;;  %1032 = vmatpush1.msra.mxu1 %v2155_v40 }
 0x22b   :  { %962 = vmatprep.subr.mxu0 %v2159_v41  ;;  %1033 = vmatprep.subr.mxu1 %v2161_v42 }
 0x22c   :  { %963 = vmatpush1.msra.mxu0 %v2167_v43  ;;  %1034 = vmatpush1.msra.mxu1 %v2169_v44 }
 0x22d   :  { %964 = vmatprep.subr.mxu0 %v2178_v46  ;;  %1035 = vmatprep.subr.mxu1 %v2180_v47 }
 0x22e   :  { %965 = vmatpush1.msra.mxu0 %v2184_v48  ;;  %1036 = vmatpush1.msra.mxu1 %v2186_v49 }
 0x22f   :  { %966 = vmatprep.subr.mxu0 %v2190_v50  ;;  %1037 = vmatprep.subr.mxu1 %v2192_v51 }
 0x230   :  { %967 = vmatpush1.msra.mxu0 %v2198_v52  ;;  %1038 = vmatpush1.msra.mxu1 %v2200_v53 }
 0x231   :  { %968 = vmatprep.subr.mxu0 %v2209_v55  ;;  %1039 = vmatprep.subr.mxu1 %v2211_v56 }
 0x232   :  { %969 = vmatpush1.msra.mxu0 %v2215_v57  ;;  %1040 = vmatpush1.msra.mxu1 %v2217_v58 }
 0x233   :  { %970 = vmatprep.subr.mxu0 %v3219_v54  ;;  %1041 = vmatprep.subr.mxu1 %v3246_v12 }
 0x234   :  { %971 = vmatpush1.msra.mxu0 %v3247_v13  ;;  %1042 = vmatpush1.msra.mxu1 %v3248_v14 }
 0x235   :  { %972 = vmatprep.subr.mxu0 %v3249_v15  ;;  %1043 = vmatprep.subr.mxu1 %v3250_v16 }
 0x236   :  { %973 = vmatpush1.msra.mxu0 %v3251_v17  ;;  %1044 = vmatpush1.msra.mxu1 %v3252_v19 }
 0x237   :  { %974 = vmatprep.subr.mxu0 %v3253_v20  ;;  %1045 = vmatprep.subr.mxu1 %v3254_v21 }
 0x238   :  { %975 = vmatpush1.msra.mxu0 %v3255_v22  ;;  %1046 = vmatpush1.msra.mxu1 %v3256_v23 }
 0x239   :  { %976 = vmatprep.subr.mxu0 %v3257_v24  ;;  %1047 = vmatprep.subr.mxu1 %v3258_v25 }
 0x23a   :  { %977 = vmatpush1.msra.mxu0 %v3259_v26  ;;  %1048 = vmatpush1.msra.mxu1 %v3260_v28 }
 0x23b   :  { %978 = vmatprep.subr.mxu0 %v3261_v29  ;;  %1049 = vmatprep.subr.mxu1 %v3262_v30 }
 0x23c   :  { %979 = vmatpush1.msra.mxu0 %v3263_v31  ;;  %1012 = vmatprep.mubr.f32.mxu0 %v3264_v32 }
 0x23d   :  { %1050 = vmatpush1.msra.mxu1 %v3265_v33  ;;  %1083 = vmatprep.mubr.f32.mxu1 %v3264_v32 }
 0x23e   :  { %1117 = vmatprep.subr.mxu0 %v2613_v34  ;;  %1188 = vmatprep.subr.mxu1 %v2616_v35 }
 0x2dd   :  { %v845_v1 = vpop.f32.mrf.mxu0  ;;  %v916_v60 = vpop.f32.mrf.mxu1 }
 0x2de   :  { %v921_v10 = vadd.f32 %v845_v1, %v3268_v0  ;;  %v923_v3 = vadd.f32 %v916_v60, %v3270_v36 }
 0x2df   :  { %v847_v7 = vpop.f32.mrf.mxu0  ;;  %v918_v27 = vpop.f32.mrf.mxu1 }
 0x2e0   :  { %v925_v4 = vmul.f32 0.5, %v921_v10  ;;  %v922_v62 = vadd.f32 %v847_v7, %v3269_v8  ;;  %v924_v11 = vadd.f32 %v918_v27, %v3271_v18  ;;  %v2636_v27 = vld [vmem:[#allocation3 + $0x1c8] sm:$0xff]  ;;  %v2639_v18 = vld [vmem:[#allocation3 + $0x1d8] sm:$0xff] }
 0x2e2   :  { %1839 = vtanh.f32 %v925_v4  ;;  %v929_v45 = vmul.f32 0.5, %v922_v62  ;;  %v934_v59 = vmul.f32 0.5, %v924_v11  ;;  %v2642_v11 = vld [vmem:[#allocation3 + $0x1c0] sm:$0xff] }
 0x2e4   :  { %1841 = vtanh.f32 %v929_v45  ;;  %v2630_v45 = vld [vmem:[#allocation3 + $0x1e0] sm:$0xff] }
 0x2e5   :  { %1843 = vtanh.f32 %v923_v3 }
 0x2e6   :  { %1845 = vtanh.f32 %v934_v59  ;;  %v2645_v59 = vld [vmem:[#allocation3 + $0x1d0] sm:$0xff] }
 0x2ef   :  { %v1840_v9 = vpop.eup %1839 }
 0x2f0   :  { %v927_v2 = vmul.f32 0.5, %v1840_v9  ;;  %v2648_v9 = vld [vmem:[#allocation3 + $0x1a8] sm:$0xff] }
 0x2f1   :  { %v1842_v61 = vpop.eup %1841 }
 0x2f2   :  { %v928_v6 = vadd.f32 0.5, %v927_v2  ;;  %v931_v5 = vmul.f32 0.5, %v1842_v61  ;;  %v1844_v1 = vpop.eup %1843  ;;  %v2651_v2 = vld [vmem:[#allocation3 + $0x1b8] sm:$0xff]  ;;  %v2654_v61 = vld [vmem:[#allocation3 + $0x1a0] sm:$0xff] }
 0x2f3   :  { %v1846_v60 = vpop.eup %1845 }
 0x2f4   :  { %v932_v0 = vadd.f32 0.5, %v931_v5  ;;  %v939_v10 = vmul.f32 %v1844_v1, %v928_v6  ;;  %v936_v8 = vmul.f32 0.5, %v1846_v60  ;;  %v2657_v6 = vld [vmem:[#allocation3 + $0x1b0] sm:$0xff]  ;;  %v2660_v5 = vld [vmem:[#allocation3 + $0x188] sm:$0xff]  ;;  %v2663_v1 = vld [vmem:[#allocation3 + $0x198] sm:$0xff] }
 0x2f5   :  { %v2675_v60 = vld [vmem:[#allocation3 + $0x178] sm:$0xff] }
 0x2f6   :  { %v938_v7 = vmul.f32 %v932_v0, %v2543_v63  ;;  %v937_v62 = vadd.f32 0.5, %v936_v8  ;;  %v2633_v63 = vld [vmem:[#allocation3 + $0x1f0] sm:$0xff]  ;;  %v2666_v0 = vld [vmem:[#allocation3 + $0x180] sm:$0xff]  ;;  %3273 = vst [vmem:[#allocation28_spill] sm:$0xff] %v2675_v60 }
 0x2f7   :  { %v2678_v8 = vld [vmem:[#allocation3 + $0x160] sm:$0xff] }
 0x2f8   :  { %v2624_v4 = vadd.f32 %v939_v10, %v938_v7  ;;  %v2669_v10 = vld [vmem:[#allocation3 + $0x190] sm:$0xff]  ;;  %v2672_v7 = vld [vmem:[#allocation3 + $0x168] sm:$0xff] }
 0x2f9   :  { %3272 = vst [vmem:[#allocation7_spill] sm:$0xff] %v2672_v7 }
 0x2fa   :  { %1847 = vtanh.f32 %v2624_v4 }
 0x307   :  { %v1848_v36 = vpop.eup %1847 }
 0x308   :  { %v942_v3 = vmul.f32 %v1848_v36, %v937_v62  ;;  %v2681_v62 = vld [vmem:[#allocation3 + $0x170] sm:$0xff]  ;;  %v2684_v36 = vld [vmem:[#allocation3 + $0x148] sm:$0xff] }
 0x30a   :  { %943 = vst [vmem:[%s3073_s6 + $0x10] sm:$0xff] %v942_v3  ;;  %1013 = vmatmul.mubr.f32.vlgmr.msra.gmra.mxu0 %v942_v3  ;;  %1084 = vmatmul.mubr.f32.vlgmr.msra.gmra.mxu1 %v942_v3  ;;  %v2687_v3 = vld [vmem:[#allocation3 + $0x158] sm:$0xff] }
 0x30b   :  { %1118 = vmatpush1.msra.mxu0 %v2630_v45  ;;  %1189 = vmatpush1.msra.mxu1 %v2633_v63 }
 0x30c   :  { %1119 = vmatprep.subr.mxu0 %v2636_v27  ;;  %1190 = vmatprep.subr.mxu1 %v2639_v18 }
 0x30d   :  { %1120 = vmatpush1.msra.mxu0 %v2642_v11  ;;  %1191 = vmatpush1.msra.mxu1 %v2645_v59 }
 0x30e   :  { %1121 = vmatprep.subr.mxu0 %v2648_v9  ;;  %1192 = vmatprep.subr.mxu1 %v2651_v2 }
 0x30f   :  { %1122 = vmatpush1.msra.mxu0 %v2654_v61  ;;  %1193 = vmatpush1.msra.mxu1 %v2657_v6 }
 0x310   :  { %1123 = vmatprep.subr.mxu0 %v2660_v5  ;;  %1194 = vmatprep.subr.mxu1 %v2663_v1 }
 0x311   :  { %1124 = vmatpush1.msra.mxu0 %v2666_v0  ;;  %1195 = vmatpush1.msra.mxu1 %v2669_v10 }
 0x312   :  { %1125 = vmatprep.subr.mxu0 %v2672_v7  ;;  %1196 = vmatprep.subr.mxu1 %v2675_v60  ;;  %v2690_v7 = vld [vmem:[#allocation3 + $0x140] sm:$0xff]  ;;  %v2693_v60 = vld [vmem:[#allocation3 + $0x150] sm:$0xff] }
 0x313   :  { %1126 = vmatpush1.msra.mxu0 %v2678_v8  ;;  %1197 = vmatpush1.msra.mxu1 %v2681_v62 }
 0x314   :  { %1127 = vmatprep.subr.mxu0 %v2684_v36  ;;  %1198 = vmatprep.subr.mxu1 %v2687_v3 }
 0x315   :  { %1128 = vmatpush1.msra.mxu0 %v2690_v7  ;;  %1199 = vmatpush1.msra.mxu1 %v2693_v60 }
 0x316   :  { %1129 = vmatprep.subr.mxu0 %v2147_v37  ;;  %1200 = vmatprep.subr.mxu1 %v2149_v38  ;;  %v3274_v38 = vld [vmem:[#allocation36_spill] sm:$0xff] }
 0x317   :  { %1130 = vmatpush1.msra.mxu0 %v2153_v39  ;;  %1201 = vmatpush1.msra.mxu1 %v2155_v40 }
 0x318   :  { %1131 = vmatprep.subr.mxu0 %v2159_v41  ;;  %1202 = vmatprep.subr.mxu1 %v2161_v42 }
 0x319   :  { %1132 = vmatpush1.msra.mxu0 %v2167_v43  ;;  %1203 = vmatpush1.msra.mxu1 %v2169_v44  ;;  %v3275_v43 = vld [vmem:[#allocation38_spill] sm:$0xff] }
 0x31a   :  { %1133 = vmatprep.subr.mxu0 %v2178_v46  ;;  %1204 = vmatprep.subr.mxu1 %v2180_v47  ;;  %v3276_v46 = vld [vmem:[#allocation37_spill] sm:$0xff] }
 0x31b   :  { %1134 = vmatpush1.msra.mxu0 %v2184_v48  ;;  %1205 = vmatpush1.msra.mxu1 %v2186_v49 }
 0x31c   :  { %1135 = vmatprep.subr.mxu0 %v2190_v50  ;;  %1206 = vmatprep.subr.mxu1 %v2192_v51  ;;  %v3277_v50 = vld [vmem:[#allocation39_spill] sm:$0xff] }
 0x31d   :  { %1136 = vmatpush1.msra.mxu0 %v2198_v52  ;;  %1207 = vmatpush1.msra.mxu1 %v2200_v53 }
 0x31e   :  { %1137 = vmatprep.subr.mxu0 %v2209_v55  ;;  %1208 = vmatprep.subr.mxu1 %v2211_v56 }
 0x31f   :  { %1138 = vmatpush1.msra.mxu0 %v2215_v57  ;;  %1209 = vmatpush1.msra.mxu1 %v2217_v58 }
 0x320   :  { %1139 = vmatprep.subr.mxu0 %v3219_v54  ;;  %1210 = vmatprep.subr.mxu1 %v3246_v12 }
 0x321   :  { %1140 = vmatpush1.msra.mxu0 %v3247_v13  ;;  %1211 = vmatpush1.msra.mxu1 %v3248_v14 }
 0x322   :  { %1141 = vmatprep.subr.mxu0 %v3249_v15  ;;  %1212 = vmatprep.subr.mxu1 %v3250_v16 }
 0x323   :  { %1142 = vmatpush1.msra.mxu0 %v3251_v17  ;;  %1213 = vmatpush1.msra.mxu1 %v3252_v19 }
 0x324   :  { %1143 = vmatprep.subr.mxu0 %v3253_v20  ;;  %1214 = vmatprep.subr.mxu1 %v3254_v21 }
 0x325   :  { %1144 = vmatpush1.msra.mxu0 %v3255_v22  ;;  %1215 = vmatpush1.msra.mxu1 %v3256_v23  ;;  %v3278_v22 = vld [vmem:[#allocation7_spill] sm:$0xff]  ;;  %v3279_v23 = vld [vmem:[#allocation28_spill] sm:$0xff] }
 0x326   :  { %1145 = vmatprep.subr.mxu0 %v3257_v24  ;;  %1216 = vmatprep.subr.mxu1 %v3258_v25  ;;  %v2773_v24 = vld [vmem:[#allocation3 + $0x128] sm:$0xff]  ;;  %v2776_v25 = vld [vmem:[#allocation3 + $0x138] sm:$0xff] }
 0x327   :  { %1146 = vmatpush1.msra.mxu0 %v3259_v26  ;;  %1217 = vmatpush1.msra.mxu1 %v3260_v28  ;;  %v2779_v26 = vld [vmem:[#allocation3 + $0x120] sm:$0xff]  ;;  %v2782_v28 = vld [vmem:[#allocation3 + $0x130] sm:$0xff] }
 0x328   :  { %1147 = vmatprep.subr.mxu0 %v3261_v29  ;;  %1218 = vmatprep.subr.mxu1 %v3262_v30  ;;  %v2785_v29 = vld [vmem:[#allocation3 + $0x108] sm:$0xff]  ;;  %v2788_v30 = vld [vmem:[#allocation3 + $0x118] sm:$0xff] }
 0x329   :  { %1148 = vmatpush1.msra.mxu0 %v3263_v31  ;;  %1181 = vmatprep.mubr.f32.mxu0 %v3264_v32  ;;  %v2791_v31 = vld [vmem:[#allocation3 + $0x100] sm:$0xff] }
 0x32a   :  { %1219 = vmatpush1.msra.mxu1 %v3265_v33  ;;  %1252 = vmatprep.mubr.f32.mxu1 %v3264_v32  ;;  %v2794_v33 = vld [vmem:[#allocation3 + $0x110] sm:$0xff] }
 0x32b   :  { %1286 = vmatprep.subr.mxu0 %v2613_v34  ;;  %1357 = vmatprep.subr.mxu1 %v2616_v35 }
 0x3ca   :  { %v1014_v37 = vpop.f32.mrf.mxu0  ;;  %v1085_v40 = vpop.f32.mrf.mxu1 }
 0x3cb   :  { %v1090_v39 = vadd.f32 %v1014_v37, %v3274_v38  ;;  %v1092_v47 = vadd.f32 %v1085_v40, %v3276_v46  ;;  %v2800_v37 = vld [vmem:[#allocation3 + $0xf8] sm:$0xff]  ;;  %v2803_v38 = vld [vmem:[#allocation3 + $0xe0] sm:$0xff]  ;;  %v2809_v40 = vld [vmem:[#allocation3 + $0xc8] sm:$0xff] }
 0x3cc   :  { %v1016_v41 = vpop.f32.mrf.mxu0  ;;  %v1087_v49 = vpop.f32.mrf.mxu1  ;;  %v2824_v46 = vld [vmem:[#allocation3 + $0xb8] sm:$0xff] }
 0x3cd   :  { %v1094_v42 = vmul.f32 0.5, %v1090_v39  ;;  %v1091_v44 = vadd.f32 %v1016_v41, %v3275_v43  ;;  %v1093_v51 = vadd.f32 %v1087_v49, %v3277_v50  ;;  %v2806_v39 = vld [vmem:[#allocation3 + $0xf0] sm:$0xff]  ;;  %v2812_v41 = vld [vmem:[#allocation3 + $0xd8] sm:$0xff]  ;;  %v2833_v49 = vld [vmem:[#allocation3 + $0x88] sm:$0xff] }
 0x3ce   :  { %v2818_v43 = vld [vmem:[#allocation3 + $0xd0] sm:$0xff]  ;;  %v2836_v50 = vld [vmem:[#allocation3 + $0x98] sm:$0xff] }
 0x3cf   :  { %1849 = vtanh.f32 %v1094_v42  ;;  %v1098_v48 = vmul.f32 0.5, %v1091_v44  ;;  %v1103_v52 = vmul.f32 0.5, %v1093_v51  ;;  %v2815_v42 = vld [vmem:[#allocation3 + $0xc0] sm:$0xff]  ;;  %v2821_v44 = vld [vmem:[#allocation3 + $0xa8] sm:$0xff]  ;;  %3280 = vst [vmem:[#allocation30_spill] sm:$0xff] %v2836_v50 }
 0x3d0   :  { %v2839_v51 = vld [vmem:[#allocation3 + $0x80] sm:$0xff] }
 0x3d1   :  { %1851 = vtanh.f32 %v1098_v48  ;;  %v2830_v48 = vld [vmem:[#allocation3 + $0xb0] sm:$0xff]  ;;  %3281 = vst [vmem:[#allocation29_spill] sm:$0xff] %v2839_v51 }
 0x3d2   :  { %1853 = vtanh.f32 %v1092_v47  ;;  %v2827_v47 = vld [vmem:[#allocation3 + $0xa0] sm:$0xff] }
 0x3d3   :  { %1855 = vtanh.f32 %v1103_v52  ;;  %v2842_v52 = vld [vmem:[#allocation3 + $0x90] sm:$0xff] }
 0x3d4   :  { %3282 = vst [vmem:[#allocation31_spill] sm:$0xff] %v2842_v52 }
 0x3dc   :  { %v1850_v53 = vpop.eup %1849 }
 0x3dd   :  { %v1096_v55 = vmul.f32 0.5, %v1850_v53  ;;  %v2845_v53 = vld [vmem:[#allocation3 + $0x68] sm:$0xff] }
 0x3de   :  { %v1852_v56 = vpop.eup %1851  ;;  %3283 = vst [vmem:[#allocation9_spill] sm:$0xff] %v2845_v53 }
 0x3df   :  { %v1097_v57 = vadd.f32 0.5, %v1096_v55  ;;  %v1100_v58 = vmul.f32 0.5, %v1852_v56  ;;  %v1854_v54 = vpop.eup %1853  ;;  %v2848_v55 = vld [vmem:[#allocation3 + $0x78] sm:$0xff]  ;;  %v2851_v56 = vld [vmem:[#allocation3 + $0x60] sm:$0xff] }
 0x3e0   :  { %v1856_v16 = vpop.eup %1855  ;;  %3284 = vst [vmem:[#allocation10_spill] sm:$0xff] %v2848_v55  ;;  %3285 = vst [vmem:[#allocation11_spill] sm:$0xff] %v2851_v56 }
 0x3e1   :  { %v1101_v12 = vadd.f32 0.5, %v1100_v58  ;;  %v1108_v13 = vmul.f32 %v1854_v54, %v1097_v57  ;;  %v1105_v17 = vmul.f32 0.5, %v1856_v16  ;;  %v2854_v57 = vld [vmem:[#allocation3 + $0x70] sm:$0xff]  ;;  %v2857_v58 = vld [vmem:[#allocation3 + $0x48] sm:$0xff]  ;;  %v2860_v54 = vld [vmem:[#allocation3 + $0x58] sm:$0xff] }
 0x3e2   :  { %3286 = vst [vmem:[#allocation12_spill] sm:$0xff] %v2854_v57  ;;  %3287 = vst [vmem:[#allocation13_spill] sm:$0xff] %v2857_v58  ;;  %v2872_v16 = vld [vmem:[#allocation3 + $0x38] sm:$0xff] }
 0x3e3   :  { %v1107_v14 = vmul.f32 %v1101_v12, %v2624_v4  ;;  %v1106_v19 = vadd.f32 0.5, %v1105_v17  ;;  %v2797_v4 = vld [vmem:[#allocation3 + $0xe8] sm:$0xff]  ;;  %3288 = vst [vmem:[#allocation14_spill] sm:$0xff] %v2860_v54  ;;  %v2863_v12 = vld [vmem:[#allocation3 + $0x40] sm:$0xff]  ;;  %3292 = vst [vmem:[#allocation18_spill] sm:$0xff] %v2872_v16 }
 0x3e4   :  { %3289 = vst [vmem:[#allocation15_spill] sm:$0xff] %v2863_v12  ;;  %v2875_v17 = vld [vmem:[#allocation3 + $0x20] sm:$0xff] }
 0x3e5   :  { %v2745_v15 = vadd.f32 %v1108_v13, %v1107_v14  ;;  %v2866_v13 = vld [vmem:[#allocation3 + $0x50] sm:$0xff]  ;;  %v2869_v14 = vld [vmem:[#allocation3 + $0x28] sm:$0xff]  ;;  %3293 = vst [vmem:[#allocation19_spill] sm:$0xff] %v2875_v17 }
 0x3e6   :  { %3290 = vst [vmem:[#allocation16_spill] sm:$0xff] %v2866_v13  ;;  %3291 = vst [vmem:[#allocation17_spill] sm:$0xff] %v2869_v14 }
 0x3e7   :  { %1857 = vtanh.f32 %v2745_v15 }
 0x3f4   :  { %v1858_v20 = vpop.eup %1857 }
 0x3f5   :  { %v1111_v21 = vmul.f32 %v1858_v20, %v1106_v19  ;;  %v2878_v19 = vld [vmem:[#allocation3 + $0x30] sm:$0xff]  ;;  %v2881_v20 = vld [vmem:[#allocation3 + $0x8] sm:$0xff] }
 0x3f6   :  { %3294 = vst [vmem:[#allocation20_spill] sm:$0xff] %v2878_v19  ;;  %3295 = vst [vmem:[#allocation21_spill] sm:$0xff] %v2881_v20 }
 0x3f7   :  { %1112 = vst [vmem:[%s3073_s6 + $0x18] sm:$0xff] %v1111_v21  ;;  %1182 = vmatmul.mubr.f32.vlgmr.msra.gmra.mxu0 %v1111_v21  ;;  %1253 = vmatmul.mubr.f32.vlgmr.msra.gmra.mxu1 %v1111_v21  ;;  %v2884_v21 = vld [vmem:[#allocation3 + $0x18] sm:$0xff] }
 0x3f8   :  { %1287 = vmatpush1.msra.mxu0 %v2630_v45  ;;  %1358 = vmatpush1.msra.mxu1 %v2633_v63  ;;  %3296 = vst [vmem:[#allocation22_spill] sm:$0xff] %v2884_v21 }
 0x3f9   :  { %1288 = vmatprep.subr.mxu0 %v2636_v27  ;;  %1359 = vmatprep.subr.mxu1 %v2639_v18 }
 0x3fa   :  { %1289 = vmatpush1.msra.mxu0 %v2642_v11  ;;  %1360 = vmatpush1.msra.mxu1 %v2645_v59 }
 0x3fb   :  { %1290 = vmatprep.subr.mxu0 %v2648_v9  ;;  %1361 = vmatprep.subr.mxu1 %v2651_v2 }
 0x3fc   :  { %1291 = vmatpush1.msra.mxu0 %v2654_v61  ;;  %1362 = vmatpush1.msra.mxu1 %v2657_v6 }
 0x3fd   :  { %1292 = vmatprep.subr.mxu0 %v2660_v5  ;;  %1363 = vmatprep.subr.mxu1 %v2663_v1 }
 0x3fe   :  { %1293 = vmatpush1.msra.mxu0 %v2666_v0  ;;  %1364 = vmatpush1.msra.mxu1 %v2669_v10 }
 0x3ff   :  { %1294 = vmatprep.subr.mxu0 %v3278_v22  ;;  %1365 = vmatprep.subr.mxu1 %v3279_v23 }
 0x400   :  { %1295 = vmatpush1.msra.mxu0 %v2678_v8  ;;  %1366 = vmatpush1.msra.mxu1 %v2681_v62 }
 0x401   :  { %1296 = vmatprep.subr.mxu0 %v2684_v36  ;;  %1367 = vmatprep.subr.mxu1 %v2687_v3 }
 0x402   :  { %1297 = vmatpush1.msra.mxu0 %v2690_v7  ;;  %1368 = vmatpush1.msra.mxu1 %v2693_v60 }
 0x403   :  { %1298 = vmatprep.subr.mxu0 %v2773_v24  ;;  %1369 = vmatprep.subr.mxu1 %v2776_v25 }
 0x404   :  { %1299 = vmatpush1.msra.mxu0 %v2779_v26  ;;  %1370 = vmatpush1.msra.mxu1 %v2782_v28 }
 0x405   :  { %1300 = vmatprep.subr.mxu0 %v2785_v29  ;;  %1371 = vmatprep.subr.mxu1 %v2788_v30 }
 0x406   :  { %1301 = vmatpush1.msra.mxu0 %v2791_v31  ;;  %1372 = vmatpush1.msra.mxu1 %v2794_v33 }
 0x407   :  { %1302 = vmatprep.subr.mxu0 %v2797_v4  ;;  %1373 = vmatprep.subr.mxu1 %v2800_v37 }
 0x408   :  { %1303 = vmatpush1.msra.mxu0 %v2803_v38  ;;  %1374 = vmatpush1.msra.mxu1 %v2806_v39 }
 0x409   :  { %1304 = vmatprep.subr.mxu0 %v2809_v40  ;;  %1375 = vmatprep.subr.mxu1 %v2812_v41 }
 0x40a   :  { %1305 = vmatpush1.msra.mxu0 %v2815_v42  ;;  %1376 = vmatpush1.msra.mxu1 %v2818_v43 }
 0x40b   :  { %1306 = vmatprep.subr.mxu0 %v2821_v44  ;;  %1377 = vmatprep.subr.mxu1 %v2824_v46 }
 0x40c   :  { %1307 = vmatpush1.msra.mxu0 %v2827_v47  ;;  %1378 = vmatpush1.msra.mxu1 %v2830_v48 }
 0x40d   :  { %1308 = vmatprep.subr.mxu0 %v2833_v49  ;;  %1379 = vmatprep.subr.mxu1 %v2836_v50 }
 0x40e   :  { %1309 = vmatpush1.msra.mxu0 %v2839_v51  ;;  %1380 = vmatpush1.msra.mxu1 %v2842_v52 }
 0x40f   :  { %1310 = vmatprep.subr.mxu0 %v2845_v53  ;;  %1381 = vmatprep.subr.mxu1 %v2848_v55 }
 0x410   :  { %1311 = vmatpush1.msra.mxu0 %v2851_v56  ;;  %1382 = vmatpush1.msra.mxu1 %v2854_v57 }
 0x411   :  { %1312 = vmatprep.subr.mxu0 %v2857_v58  ;;  %1383 = vmatprep.subr.mxu1 %v2860_v54  ;;  %v3300_v54 = vld [vmem:[#allocation42_spill] sm:$0xff]  ;;  %v3301_v58 = vld [vmem:[#allocation41_spill] sm:$0xff] }
 0x412   :  { %1313 = vmatpush1.msra.mxu0 %v2863_v12  ;;  %1384 = vmatpush1.msra.mxu1 %v2866_v13 }
 0x413   :  { %1314 = vmatprep.subr.mxu0 %v2869_v14  ;;  %1385 = vmatprep.subr.mxu1 %v2872_v16  ;;  %v2887_v14 = vld [vmem:[#allocation3] sm:$0xff]  ;;  %v2891_v16 = vld [vmem:[#allocation3 + $0x10] sm:$0xff] }
 0x414   :  { %1315 = vmatpush1.msra.mxu0 %v2875_v17  ;;  %1386 = vmatpush1.msra.mxu1 %v2878_v19  ;;  %3297 = vst [vmem:[#allocation23_spill] sm:$0xff] %v2887_v14  ;;  %3298 = vst [vmem:[#allocation24_spill] sm:$0xff] %v2891_v16  ;;  %v3299_v19 = vld [vmem:[#allocation40_spill] sm:$0xff] }
 0x415   :  { %1316 = vmatprep.subr.mxu0 %v2881_v20  ;;  %1387 = vmatprep.subr.mxu1 %v2884_v21 }
 0x416   :  { %1317 = vmatpush1.msra.mxu0 %v2887_v14  ;;  %1350 = vmatprep.mubr.f32.mxu0 %v3264_v32 }
 0x417   :  { %1388 = vmatpush1.msra.mxu1 %v2891_v16  ;;  %1421 = vmatprep.mubr.f32.mxu1 %v3264_v32  ;;  %v3302_v32 = vld [vmem:[#allocation43_spill] sm:$0xff] }
 0x418   :  { %1455 = vmatprep.subr.mxu0 %v2613_v34  ;;  %1526 = vmatprep.subr.mxu1 %v2616_v35 }
 0x4b7   :  { %v1183_v20 = vpop.f32.mrf.mxu0  ;;  %v1254_v21 = vpop.f32.mrf.mxu1 }
 0x4b8   :  { %v1259_v17 = vadd.f32 %v1183_v20, %v3299_v19  ;;  %v1261_v57 = vadd.f32 %v1254_v21, %v3301_v58  ;;  %v3313_v21 = vld [vmem:[#allocation16_spill] sm:$0xff] }
 0x4b9   :  { %v1185_v13 = vpop.f32.mrf.mxu0  ;;  %v1256_v16 = vpop.f32.mrf.mxu1 }
 0x4ba   :  { %v1263_v12 = vmul.f32 0.5, %v1259_v17  ;;  %v1260_v14 = vadd.f32 %v1185_v13, %v3300_v54  ;;  %v1262_v55 = vadd.f32 %v1256_v16, %v3302_v32  ;;  %v3310_v13 = vld [vmem:[#allocation13_spill] sm:$0xff]  ;;  %v3312_v16 = vld [vmem:[#allocation15_spill] sm:$0xff] }
 0x4bc   :  { %1859 = vtanh.f32 %v1263_v12  ;;  %v1267_v56 = vmul.f32 0.5, %v1260_v14  ;;  %v1272_v34 = vmul.f32 0.5, %v1262_v55  ;;  %v3311_v14 = vld [vmem:[#allocation14_spill] sm:$0xff] }
 0x4be   :  { %1861 = vtanh.f32 %v1267_v56 }
 0x4bf   :  { %1863 = vtanh.f32 %v1261_v57 }
 0x4c0   :  { %1865 = vtanh.f32 %v1272_v34  ;;  %v3303_v34 = vld [vmem:[#allocation30_spill] sm:$0xff] }
 0x4c9   :  { %v1860_v53 = vpop.eup %1859 }
 0x4ca   :  { %v1265_v35 = vmul.f32 0.5, %v1860_v53  ;;  %v3309_v53 = vld [vmem:[#allocation12_spill] sm:$0xff] }
 0x4cb   :  { %v1862_v52 = vpop.eup %1861 }
 0x4cc   :  { %v1266_v51 = vadd.f32 0.5, %v1265_v35  ;;  %v1269_v19 = vmul.f32 0.5, %v1862_v52  ;;  %v1864_v20 = vpop.eup %1863  ;;  %v3304_v35 = vld [vmem:[#allocation29_spill] sm:$0xff]  ;;  %v3308_v52 = vld [vmem:[#allocation11_spill] sm:$0xff] }
 0x4cd   :  { %v1866_v56 = vpop.eup %1865 }
 0x4ce   :  { %v1270_v17 = vadd.f32 0.5, %v1269_v19  ;;  %v1277_v50 = vmul.f32 %v1864_v20, %v1266_v51  ;;  %v1274_v57 = vmul.f32 0.5, %v1866_v56  ;;  %v3307_v51 = vld [vmem:[#allocation10_spill] sm:$0xff]  ;;  %v3314_v19 = vld [vmem:[#allocation17_spill] sm:$0xff] }
 0x4cf   :  { %v3315_v20 = vld [vmem:[#allocation18_spill] sm:$0xff]  ;;  %v3318_v56 = vld [vmem:[#allocation21_spill] sm:$0xff] }
 0x4d0   :  { %v1276_v54 = vmul.f32 %v1270_v17, %v2745_v15  ;;  %v1275_v58 = vadd.f32 0.5, %v1274_v57  ;;  %v3305_v15 = vld [vmem:[#allocation31_spill] sm:$0xff]  ;;  %v3319_v57 = vld [vmem:[#allocation22_spill] sm:$0xff] }
 0x4d1   :  { %v3316_v17 = vld [vmem:[#allocation19_spill] sm:$0xff] }
 0x4d2   :  { %v2902_v12 = vadd.f32 %v1277_v50, %v1276_v54  ;;  %v3306_v50 = vld [vmem:[#allocation9_spill] sm:$0xff]  ;;  %v3317_v54 = vld [vmem:[#allocation20_spill] sm:$0xff] }
 0x4d4   :  { %1867 = vtanh.f32 %v2902_v12 }
 0x4e1   :  { %v1868_v32 = vpop.eup %1867 }
 0x4e2   :  { %v1280_v55 = vmul.f32 %v1868_v32, %v1275_v58  ;;  %v3320_v58 = vld [vmem:[#allocation23_spill] sm:$0xff]  ;;  %v3321_v32 = vmov 0.0  }
 0x4e4   :  { %1281 = vst [vmem:[%s3073_s6 + $0x20] sm:$0xff] %v1280_v55  ;;  %1351 = vmatmul.mubr.f32.vlgmr.msra.gmra.mxu0 %v1280_v55  ;;  %1422 = vmatmul.mubr.f32.vlgmr.msra.gmra.mxu1 %v1280_v55  ;;  %v3322_v55 = vld [vmem:[#allocation24_spill] sm:$0xff] }
 0x4e5   :  { %1456 = vmatpush1.msra.mxu0 %v2630_v45  ;;  %1527 = vmatpush1.msra.mxu1 %v2633_v63 }
 0x4e6   :  { %1457 = vmatprep.subr.mxu0 %v2636_v27  ;;  %1528 = vmatprep.subr.mxu1 %v2639_v18 }
 0x4e7   :  { %1458 = vmatpush1.msra.mxu0 %v2642_v11  ;;  %1529 = vmatpush1.msra.mxu1 %v2645_v59 }
 0x4e8   :  { %1459 = vmatprep.subr.mxu0 %v2648_v9  ;;  %1530 = vmatprep.subr.mxu1 %v2651_v2 }
 0x4e9   :  { %1460 = vmatpush1.msra.mxu0 %v2654_v61  ;;  %1531 = vmatpush1.msra.mxu1 %v2657_v6 }
 0x4ea   :  { %1461 = vmatprep.subr.mxu0 %v2660_v5  ;;  %1532 = vmatprep.subr.mxu1 %v2663_v1 }
 0x4eb   :  { %1462 = vmatpush1.msra.mxu0 %v2666_v0  ;;  %1533 = vmatpush1.msra.mxu1 %v2669_v10 }
 0x4ec   :  { %1463 = vmatprep.subr.mxu0 %v3278_v22  ;;  %1534 = vmatprep.subr.mxu1 %v3279_v23 }
 0x4ed   :  { %1464 = vmatpush1.msra.mxu0 %v2678_v8  ;;  %1535 = vmatpush1.msra.mxu1 %v2681_v62 }
 0x4ee   :  { %1465 = vmatprep.subr.mxu0 %v2684_v36  ;;  %1536 = vmatprep.subr.mxu1 %v2687_v3 }
 0x4ef   :  { %1466 = vmatpush1.msra.mxu0 %v2690_v7  ;;  %1537 = vmatpush1.msra.mxu1 %v2693_v60 }
 0x4f0   :  { %1467 = vmatprep.subr.mxu0 %v2773_v24  ;;  %1538 = vmatprep.subr.mxu1 %v2776_v25 }
 0x4f1   :  { %1468 = vmatpush1.msra.mxu0 %v2779_v26  ;;  %1539 = vmatpush1.msra.mxu1 %v2782_v28 }
 0x4f2   :  { %1469 = vmatprep.subr.mxu0 %v2785_v29  ;;  %1540 = vmatprep.subr.mxu1 %v2788_v30 }
 0x4f3   :  { %1470 = vmatpush1.msra.mxu0 %v2791_v31  ;;  %1541 = vmatpush1.msra.mxu1 %v2794_v33 }
 0x4f4   :  { %1471 = vmatprep.subr.mxu0 %v2797_v4  ;;  %1542 = vmatprep.subr.mxu1 %v2800_v37 }
 0x4f5   :  { %1472 = vmatpush1.msra.mxu0 %v2803_v38  ;;  %1543 = vmatpush1.msra.mxu1 %v2806_v39 }
 0x4f6   :  { %1473 = vmatprep.subr.mxu0 %v2809_v40  ;;  %1544 = vmatprep.subr.mxu1 %v2812_v41 }
 0x4f7   :  { %1474 = vmatpush1.msra.mxu0 %v2815_v42  ;;  %1545 = vmatpush1.msra.mxu1 %v2818_v43 }
 0x4f8   :  { %1475 = vmatprep.subr.mxu0 %v2821_v44  ;;  %1546 = vmatprep.subr.mxu1 %v2824_v46 }
 0x4f9   :  { %1476 = vmatpush1.msra.mxu0 %v2827_v47  ;;  %1547 = vmatpush1.msra.mxu1 %v2830_v48 }
 0x4fa   :  { %1477 = vmatprep.subr.mxu0 %v2833_v49  ;;  %1548 = vmatprep.subr.mxu1 %v3303_v34 }
 0x4fb   :  { %1478 = vmatpush1.msra.mxu0 %v3304_v35  ;;  %1549 = vmatpush1.msra.mxu1 %v3305_v15 }
 0x4fc   :  { %1479 = vmatprep.subr.mxu0 %v3306_v50  ;;  %1550 = vmatprep.subr.mxu1 %v3307_v51 }
 0x4fd   :  { %1480 = vmatpush1.msra.mxu0 %v3308_v52  ;;  %1551 = vmatpush1.msra.mxu1 %v3309_v53 }
 0x4fe   :  { %1481 = vmatprep.subr.mxu0 %v3310_v13  ;;  %1552 = vmatprep.subr.mxu1 %v3311_v14  ;;  %v3326_v13 = vld [vmem:[#allocation46_spill] sm:$0xff] }
 0x4ff   :  { %1482 = vmatpush1.msra.mxu0 %v3312_v16  ;;  %1553 = vmatpush1.msra.mxu1 %v3313_v21  ;;  %v3323_v21 = vld [vmem:[#allocation8_spill] sm:$0xff] }
 0x500   :  { %1483 = vmatprep.subr.mxu0 %v3314_v19  ;;  %1554 = vmatprep.subr.mxu1 %v3315_v20  ;;  %v3324_v19 = vld [vmem:[#allocation6_spill] sm:$0xff] }
 0x501   :  { %1484 = vmatpush1.msra.mxu0 %v3316_v17  ;;  %1555 = vmatpush1.msra.mxu1 %v3317_v54  ;;  %v3325_v17 = vld [vmem:[#allocation44_spill] sm:$0xff] }
 0x502   :  { %1485 = vmatprep.subr.mxu0 %v3318_v56  ;;  %1556 = vmatprep.subr.mxu1 %v3319_v57 }
 0x503   :  { %1486 = vmatpush1.msra.mxu0 %v3320_v58  ;;  %1519 = vmatprep.mubr.f32.mxu0 %v3321_v32  ;;  %v3327_v58 = vld [vmem:[#allocation45_spill] sm:$0xff] }
 0x504   :  { %1557 = vmatpush1.msra.mxu1 %v3322_v55  ;;  %1590 = vmatprep.mubr.f32.mxu1 %v3321_v32  ;;  %v3328_v32 = vld [vmem:[#allocation47_spill] sm:$0xff] }
 0x505   :  { %1624 = vmatprep.subr.mxu0 %v3323_v21  ;;  %1695 = vmatprep.subr.mxu1 %v3324_v19 }
 0x5a4   :  { %v1352_v20 = vpop.f32.mrf.mxu0  ;;  %v1423_v54 = vpop.f32.mrf.mxu1 }
 0x5a5   :  { %v1428_v16 = vadd.f32 %v1352_v20, %v3325_v17  ;;  %v1430_v53 = vadd.f32 %v1423_v54, %v3327_v58 }
 0x5a6   :  { %v1354_v14 = vpop.f32.mrf.mxu0  ;;  %v1425_v55 = vpop.f32.mrf.mxu1 }
 0x5a7   :  { %v1432_v56 = vmul.f32 0.5, %v1428_v16  ;;  %v1429_v57 = vadd.f32 %v1354_v14, %v3326_v13  ;;  %v1431_v51 = vadd.f32 %v1425_v55, %v3328_v32  ;;  %v3353_v55 = vld [vmem:[#allocation52_spill] sm:$0xff] }
 0x5a9   :  { %1869 = vtanh.f32 %v1432_v56  ;;  %v1436_v52 = vmul.f32 0.5, %v1429_v57  ;;  %v1441_v21 = vmul.f32 0.5, %v1431_v51 }
 0x5ab   :  { %1871 = vtanh.f32 %v1436_v52 }
 0x5ac   :  { %1873 = vtanh.f32 %v1430_v53 }
 0x5ad   :  { %1875 = vtanh.f32 %v1441_v21 }
 0x5b6   :  { %v1870_v50 = vpop.eup %1869 }
 0x5b7   :  { %v1434_v19 = vmul.f32 0.5, %v1870_v50 }
 0x5b8   :  { %v1872_v15 = vpop.eup %1871 }
 0x5b9   :  { %v1435_v35 = vadd.f32 0.5, %v1434_v19  ;;  %v1438_v20 = vmul.f32 0.5, %v1872_v15  ;;  %v1874_v17 = vpop.eup %1873 }
 0x5ba   :  { %v1876_v52 = vpop.eup %1875 }
 0x5bb   :  { %v1439_v16 = vadd.f32 0.5, %v1438_v20  ;;  %v1446_v34 = vmul.f32 %v1874_v17, %v1435_v35  ;;  %v1443_v53 = vmul.f32 0.5, %v1876_v52 }
 0x5bd   :  { %v1445_v13 = vmul.f32 %v1439_v16, %v2902_v12  ;;  %v1444_v54 = vadd.f32 0.5, %v1443_v53  ;;  %v3354_v16 = vld [vmem:[#allocation54_spill] sm:$0xff] }
 0x5bf   :  { %v2979_v14 = vadd.f32 %v1446_v34, %v1445_v13 }
 0x5c1   :  { %1877 = vtanh.f32 %v2979_v14 }
 0x5ce   :  { %v1878_v56 = vpop.eup %1877 }
 0x5cf   :  { %v1449_v51 = vmul.f32 %v1878_v56, %v1444_v54  ;;  %v3356_v56 = vld [vmem:[#allocation55_spill] sm:$0xff] }
 0x5d1   :  { %1450 = vst [vmem:[%s3073_s6 + $0x28] sm:$0xff] %v1449_v51  ;;  %1520 = vmatmul.mubr.f32.vlgmr.msra.gmra.mxu0 %v1449_v51  ;;  %1591 = vmatmul.mubr.f32.vlgmr.msra.gmra.mxu1 %v1449_v51 }
 0x5d2   :  { %1625 = vmatpush1.msra.mxu0 %v2630_v45  ;;  %1696 = vmatpush1.msra.mxu1 %v2633_v63  ;;  %v3329_v45 = vld [vmem:[#allocation30_spill] sm:$0xff]  ;;  %v3330_v63 = vld [vmem:[#allocation29_spill] sm:$0xff] }
 0x5d3   :  { %1626 = vmatprep.subr.mxu0 %v2636_v27  ;;  %1697 = vmatprep.subr.mxu1 %v2639_v18  ;;  %v3331_v27 = vld [vmem:[#allocation31_spill] sm:$0xff]  ;;  %v3332_v18 = vld [vmem:[#allocation9_spill] sm:$0xff] }
 0x5d4   :  { %1627 = vmatpush1.msra.mxu0 %v2642_v11  ;;  %1698 = vmatpush1.msra.mxu1 %v2645_v59  ;;  %v3333_v11 = vld [vmem:[#allocation10_spill] sm:$0xff]  ;;  %v3334_v59 = vld [vmem:[#allocation11_spill] sm:$0xff] }
 0x5d5   :  { %1628 = vmatprep.subr.mxu0 %v2648_v9  ;;  %1699 = vmatprep.subr.mxu1 %v2651_v2  ;;  %v3335_v9 = vld [vmem:[#allocation12_spill] sm:$0xff]  ;;  %v3336_v2 = vld [vmem:[#allocation13_spill] sm:$0xff] }
 0x5d6   :  { %1629 = vmatpush1.msra.mxu0 %v2654_v61  ;;  %1700 = vmatpush1.msra.mxu1 %v2657_v6  ;;  %v3337_v61 = vld [vmem:[#allocation14_spill] sm:$0xff]  ;;  %v3338_v6 = vld [vmem:[#allocation15_spill] sm:$0xff] }
 0x5d7   :  { %1630 = vmatprep.subr.mxu0 %v2660_v5  ;;  %1701 = vmatprep.subr.mxu1 %v2663_v1  ;;  %v3339_v5 = vld [vmem:[#allocation16_spill] sm:$0xff]  ;;  %v3340_v1 = vld [vmem:[#allocation17_spill] sm:$0xff] }
 0x5d8   :  { %1631 = vmatpush1.msra.mxu0 %v2666_v0  ;;  %1702 = vmatpush1.msra.mxu1 %v2669_v10  ;;  %v3341_v0 = vld [vmem:[#allocation18_spill] sm:$0xff]  ;;  %v3342_v10 = vld [vmem:[#allocation19_spill] sm:$0xff] }
 0x5d9   :  { %1632 = vmatprep.subr.mxu0 %v3278_v22  ;;  %1703 = vmatprep.subr.mxu1 %v3279_v23  ;;  %v3349_v23 = vld [vmem:[#allocation48_spill] sm:$0xff] }
 0x5da   :  { %1633 = vmatpush1.msra.mxu0 %v2678_v8  ;;  %1704 = vmatpush1.msra.mxu1 %v2681_v62  ;;  %v3345_v8 = vld [vmem:[#allocation22_spill] sm:$0xff]  ;;  %v3346_v62 = vld [vmem:[#allocation23_spill] sm:$0xff] }
 0x5db   :  { %1634 = vmatprep.subr.mxu0 %v2684_v36  ;;  %1705 = vmatprep.subr.mxu1 %v2687_v3  ;;  %v3347_v36 = vmov 0.0   ;;  %v3348_v3 = vld [vmem:[#allocation24_spill] sm:$0xff] }
 0x5dc   :  { %1635 = vmatpush1.msra.mxu0 %v2690_v7  ;;  %1706 = vmatpush1.msra.mxu1 %v2693_v60  ;;  %v3343_v7 = vld [vmem:[#allocation20_spill] sm:$0xff]  ;;  %v3344_v60 = vld [vmem:[#allocation21_spill] sm:$0xff] }
 0x5dd   :  { %1636 = vmatprep.subr.mxu0 %v2773_v24  ;;  %1707 = vmatprep.subr.mxu1 %v2776_v25 }
 0x5de   :  { %1637 = vmatpush1.msra.mxu0 %v2779_v26  ;;  %1708 = vmatpush1.msra.mxu1 %v2782_v28 }
 0x5df   :  { %1638 = vmatprep.subr.mxu0 %v2785_v29  ;;  %1709 = vmatprep.subr.mxu1 %v2788_v30  ;;  %v3350_v29 = vld [vmem:[#allocation50_spill] sm:$0xff] }
 0x5e0   :  { %1639 = vmatpush1.msra.mxu0 %v2791_v31  ;;  %1710 = vmatpush1.msra.mxu1 %v2794_v33  ;;  %v3351_v31 = vld [vmem:[#allocation49_spill] sm:$0xff] }
 0x5e1   :  { %1640 = vmatprep.subr.mxu0 %v2797_v4  ;;  %1711 = vmatprep.subr.mxu1 %v2800_v37 }
 0x5e2   :  { %1641 = vmatpush1.msra.mxu0 %v2803_v38  ;;  %1712 = vmatpush1.msra.mxu1 %v2806_v39  ;;  %v3352_v38 = vld [vmem:[#allocation51_spill] sm:$0xff] }
 0x5e3   :  { %1642 = vmatprep.subr.mxu0 %v2809_v40  ;;  %1713 = vmatprep.subr.mxu1 %v2812_v41 }
 0x5e4   :  { %1643 = vmatpush1.msra.mxu0 %v2815_v42  ;;  %1714 = vmatpush1.msra.mxu1 %v2818_v43 }
 0x5e5   :  { %1644 = vmatprep.subr.mxu0 %v2821_v44  ;;  %1715 = vmatprep.subr.mxu1 %v2824_v46 }
 0x5e6   :  { %1645 = vmatpush1.msra.mxu0 %v2827_v47  ;;  %1716 = vmatpush1.msra.mxu1 %v2830_v48 }
 0x5e7   :  { %1646 = vmatprep.subr.mxu0 %v2833_v49  ;;  %1717 = vmatprep.subr.mxu1 %v3329_v45 }
 0x5e8   :  { %1647 = vmatpush1.msra.mxu0 %v3330_v63  ;;  %1718 = vmatpush1.msra.mxu1 %v3331_v27 }
 0x5e9   :  { %1648 = vmatprep.subr.mxu0 %v3332_v18  ;;  %1719 = vmatprep.subr.mxu1 %v3333_v11 }
 0x5ea   :  { %1649 = vmatpush1.msra.mxu0 %v3334_v59  ;;  %1720 = vmatpush1.msra.mxu1 %v3335_v9 }
 0x5eb   :  { %1650 = vmatprep.subr.mxu0 %v3336_v2  ;;  %1721 = vmatprep.subr.mxu1 %v3337_v61 }
 0x5ec   :  { %1651 = vmatpush1.msra.mxu0 %v3338_v6  ;;  %1722 = vmatpush1.msra.mxu1 %v3339_v5 }
 0x5ed   :  { %1652 = vmatprep.subr.mxu0 %v3340_v1  ;;  %1723 = vmatprep.subr.mxu1 %v3341_v0 }
 0x5ee   :  { %1653 = vmatpush1.msra.mxu0 %v3342_v10  ;;  %1724 = vmatpush1.msra.mxu1 %v3343_v7 }
 0x5ef   :  { %1654 = vmatprep.subr.mxu0 %v3344_v60  ;;  %1725 = vmatprep.subr.mxu1 %v3345_v8 }
 0x5f0   :  { %1655 = vmatpush1.msra.mxu0 %v3346_v62  ;;  %1688 = vmatprep.mubr.f32.mxu0 %v3347_v36 }
 0x5f1   :  { %1726 = vmatpush1.msra.mxu1 %v3348_v3  ;;  %1759 = vmatprep.mubr.f32.mxu1 %v3347_v36 }
 0x691   :  { %v1521_v22 = vpop.f32.mrf.mxu0  ;;  %v1592_v25 = vpop.f32.mrf.mxu1 }
 0x692   :  { %v1597_v24 = vadd.f32 %v1521_v22, %v3349_v23  ;;  %v1599_v33 = vadd.f32 %v1592_v25, %v3351_v31 }
 0x693   :  { %v1523_v26 = vpop.f32.mrf.mxu0  ;;  %v1594_v37 = vpop.f32.mrf.mxu1 }
 0x694   :  { %v1601_v28 = vmul.f32 0.5, %v1597_v24  ;;  %v1598_v30 = vadd.f32 %v1523_v26, %v3350_v29  ;;  %v1600_v39 = vadd.f32 %v1594_v37, %v3352_v38 }
 0x696   :  { %1879 = vtanh.f32 %v1601_v28  ;;  %v1605_v4 = vmul.f32 0.5, %v1598_v30  ;;  %v1610_v40 = vmul.f32 0.5, %v1600_v39 }
 0x698   :  { %1881 = vtanh.f32 %v1605_v4 }
 0x699   :  { %1883 = vtanh.f32 %v1599_v33 }
 0x69a   :  { %1885 = vtanh.f32 %v1610_v40 }
 0x6a3   :  { %v1880_v41 = vpop.eup %1879 }
 0x6a4   :  { %v1603_v42 = vmul.f32 0.5, %v1880_v41 }
 0x6a5   :  { %v1882_v43 = vpop.eup %1881 }
 0x6a6   :  { %v1604_v44 = vadd.f32 0.5, %v1603_v42  ;;  %v1607_v46 = vmul.f32 0.5, %v1882_v43  ;;  %v1884_v47 = vpop.eup %1883 }
 0x6a7   :  { %v1886_v35 = vpop.eup %1885 }
 0x6a8   :  { %v1608_v48 = vadd.f32 0.5, %v1607_v46  ;;  %v1615_v49 = vmul.f32 %v1884_v47, %v1604_v44  ;;  %v1612_v15 = vmul.f32 0.5, %v1886_v35 }
 0x6aa   :  { %v1614_v12 = vmul.f32 %v1608_v48, %v2979_v14  ;;  %v1613_v50 = vadd.f32 0.5, %v1612_v15  ;;  %v3355_v14 = vld [vmem:[#allocation53_spill] sm:$0xff] }
 0x6ac   :  { %v1616_v34 = vadd.f32 %v1615_v49, %v1614_v12 }
 0x6ae   :  { %1887 = vtanh.f32 %v1616_v34 }
 0x6bb   :  { %v1888_v57 = vpop.eup %1887 }
 0x6bc   :  { %v1618_v58 = vmul.f32 %v1888_v57, %v1613_v50 }
 0x6be   :  { %1619 = vst [vmem:[%s3073_s6 + $0x30] sm:$0xff] %v1618_v58  ;;  %1689 = vmatmul.mubr.f32.vlgmr.msra.gmra.mxu0 %v1618_v58  ;;  %1760 = vmatmul.mubr.f32.vlgmr.msra.gmra.mxu1 %v1618_v58 }
 0x77e   :  { %v1690_v32 = vpop.f32.mrf.mxu0  ;;  %v1761_v19 = vpop.f32.mrf.mxu1 }
 0x77f   :  { %v1766_v21 = vadd.f32 %v1690_v32, %v3353_v55  ;;  %v1768_v52 = vadd.f32 %v1761_v19, %v3355_v14 }
 0x780   :  { %v1692_v20 = vpop.f32.mrf.mxu0  ;;  %v1763_v54 = vpop.f32.mrf.mxu1 }
 0x781   :  { %v1770_v17 = vmul.f32 0.5, %v1766_v21  ;;  %v1767_v13 = vadd.f32 %v1692_v20, %v3354_v16  ;;  %v1769_v51 = vadd.f32 %v1763_v54, %v3356_v56 }
 0x783   :  { %1889 = vtanh.f32 %v1770_v17  ;;  %v1774_v53 = vmul.f32 0.5, %v1767_v13  ;;  %v1779_v45 = vmul.f32 0.5, %v1769_v51 }
 0x785   :  { %1891 = vtanh.f32 %v1774_v53 }
 0x786   :  { %1893 = vtanh.f32 %v1768_v52 }
 0x787   :  { %1895 = vtanh.f32 %v1779_v45 }
 0x790   :  { %v1890_v63 = vpop.eup %1889 }
 0x791   :  { %v1772_v27 = vmul.f32 0.5, %v1890_v63 }
 0x792   :  { %v1892_v18 = vpop.eup %1891 }
 0x793   :  { %v1773_v11 = vadd.f32 0.5, %v1772_v27  ;;  %v1776_v59 = vmul.f32 0.5, %v1892_v18  ;;  %v1894_v9 = vpop.eup %1893 }
 0x794   :  { %v1896_v1 = vpop.eup %1895 }
 0x795   :  { %v1777_v2 = vadd.f32 0.5, %v1776_v59  ;;  %v1784_v61 = vmul.f32 %v1894_v9, %v1773_v11  ;;  %v1781_v0 = vmul.f32 0.5, %v1896_v1 }
 0x797   :  { %v1783_v6 = vmul.f32 %v1777_v2, %v1616_v34  ;;  %v1782_v10 = vadd.f32 0.5, %v1781_v0 }
 0x799   :  { %v1785_v5 = vadd.f32 %v1784_v61, %v1783_v6 }
 0x79b   :  { %1897 = vtanh.f32 %v1785_v5  ;;  %1789 = vst [vmem:[%s3073_s6 + $0x40] sm:$0xff] %v1785_v5 }
 0x7a8   :  { %v1898_v7 = vpop.eup %1897 }
 0x7a9   :  { %v1787_v60 = vmul.f32 %v1898_v7, %v1782_v10 }
 0x7ab   :  { %1788 = vst [vmem:[%s3073_s6 + $0x38] sm:$0xff] %v1787_v60 }
 0x7ac   :  { %1794 = vsyncpa [#allocation4], 1 }

</bundles_post_ra>
